<compile_context>
chip_gen: v5e
topology: v5e:2x2
jax: 0.10.0
libtpu: 0.0.40
codegen_flags: <defaults>
</compile_context>

<pallas_src>
import functools

import jax
import jax.numpy as jnp
from jax.experimental import pallas as pl
from jax.experimental.pallas import tpu as pltpu

EPS = 1e-12  # same eps as l2normalize in the PyTorch module


def _round_up(x, m):
    return ((x + m - 1) // m) * m


# --------------------------------------------------------------------------
# Kernel 1: one power iteration + 1/sigma (tiny; runs once per forward).
# --------------------------------------------------------------------------
def _spectral_norm_kernel(w_ref, u_ref, u_out_ref, v_out_ref, inv_sigma_ref):
    """w_ref: [OC, K] f32 (PyTorch w.view(OC, -1) order), u_ref: [1, OC] f32.

    Outputs u_new [1, OC], v_new [1, K], inv_sigma [1, 1].  The normalized
    weight is NOT written back to HBM; the conv kernel applies 1/sigma.
    """
    w = w_ref[...]
    u = u_ref[...]

    # v = l2normalize(W^T u)  ==  l2normalize(u @ W)
    wv = jnp.dot(u, w, preferred_element_type=jnp.float32)            # [1, K]
    v = wv / (jnp.sqrt(jnp.sum(wv * wv)) + EPS)

    # u = l2normalize(W v): contract K of v against K of W (no W^T copy).
    wu = jax.lax.dot_general(v, w, (((1,), (1,)), ((), ())),
                             preferred_element_type=jnp.float32)      # [1, OC]
    u_new = wu / (jnp.sqrt(jnp.sum(wu * wu)) + EPS)

    # sigma = u_new . (W v)    (W v == wu, recomputed exactly as in torch)
    sigma = jnp.sum(u_new * wu, keepdims=True)                        # [1, 1]

    u_out_ref[...] = u_new
    v_out_ref[...] = v
    inv_sigma_ref[...] = 1.0 / sigma


# --------------------------------------------------------------------------
# Kernel 2: fused im2col conv tile (KH*KW shifted sub-matmuls, f32 accum).
# --------------------------------------------------------------------------
def _conv_tap_matmul_kernel(kh, kw, wp, m_tile,
                            inv_sigma_ref, x_ref, w_ref, b_ref, o_ref):
    """One row-tile of the stride-1 'same' conv.

    inv_sigma_ref : [1, 1]  f32  (SMEM scalar)
    x_ref         : [TH_halo*Wp + KW-1, C]  f32 — row-major-flattened halo tile
                    of the zero-padded NHWC input (flat index = h*Wp + w).
    w_ref         : [KH*KW, C, OC_pad] bf16 — per-tap weight slice, tap=i*KW+j
    b_ref         : [1, OC_pad] f32
    o_ref         : [m_tile, OC_pad] f32, m_tile = TH*Wp (incl. KW-1 garbage
                    columns per row that the XLA wrapper slices off).

    Because the tile is flattened row-major over (rows, padded cols), the
    patch element needed by output (h, w) for tap (i, j) lives at flat offset
    (h*Wp + w) + (i*Wp + j): every tap is a contiguous offset slice, so no
    in-kernel reshape/transpose is needed.
    """
    acc = jnp.zeros(o_ref.shape, jnp.float32)
    for i in range(kh):
        for j in range(kw):
            start = i * wp + j                                   # static offset
            lhs = x_ref[start:start + m_tile, :]                 # [m_tile, C] f32
            acc = acc + jnp.dot(lhs.astype(jnp.bfloat16),        # bf16 MXU inputs
                                w_ref[i * kw + j],
                                preferred_element_type=jnp.float32)
    inv_sigma = inv_sigma_ref[0, 0]
    o_ref[...] = acc * inv_sigma + b_ref[...]


# --------------------------------------------------------------------------
# Wrapper
# --------------------------------------------------------------------------
def spectral_norm_conv_forward(x, w_bar, bias, u, v, *, padding=1):
    """Forward of SpectralNorm(Conv2d(IC, OC, K, stride=1, padding=(K-1)//2)).

    x     : [N, IC, H, W]   (NCHW)
    w_bar : [OC, IC, KH, KW]
    bias  : [OC]
    u     : [OC]            power-iteration left vector
    v     : [IC*KH*KW]      (unused for power_iterations=1; kept for API parity)
    Returns (out [N, OC, H, W], u_new [OC], v_new [IC*KH*KW]).
    """
    del v  # overwritten by the first power iteration (power_iterations=1)
    n, ic, h, w = x.shape
    oc, ic_w, kh, kw = w_bar.shape
    assert ic == ic_w
    # TODO(synk): stride-2 downsampling Conv2dBlocks of ContentEncoder are not
    # covered by this kernel (stride-1 'same' conv only).
    assert kh == 2 * padding + 1 and kw == 2 * padding + 1

    height, width = oc, ic * kh * kw
    w_mat = w_bar.reshape(height, width).astype(jnp.float32)

    vmem = pl.BlockSpec(memory_space=pltpu.MemorySpace.VMEM)
    smem = pl.BlockSpec(memory_space=pltpu.MemorySpace.SMEM)

    # ---- Pallas kernel 1: power iteration -> u_new, v_new, 1/sigma ----------
    u_new, v_new, inv_sigma = pl.pallas_call(
        _spectral_norm_kernel,
        out_shape=(
            jax.ShapeDtypeStruct((1, height), jnp.float32),
            jax.ShapeDtypeStruct((1, width), jnp.float32),
            jax.ShapeDtypeStruct((1, 1), jnp.float32),
        ),
        in_specs=[vmem, vmem],
        out_specs=(vmem, vmem, vmem),
    )(w_mat, u.reshape(1, height).astype(jnp.float32))

    # ---- XLA glue: halo row-tiles of the zero-padded NHWC input -------------
    p = padding
    wp = w + 2 * p                       # padded width == per-row outputs in-kernel
    # Row tile: multiple of 8, targeting ~1024 (h, w) output rows per grid step.
    th = max(8, (1024 // wp) // 8 * 8)
    th = min(th, _round_up(h, 8))
    n_rt = pl.cdiv(h, th)
    thk = th + kh - 1                    # rows per tile incl. (KH-1)-row halo

    x_nhwc = jnp.transpose(x, (0, 2, 3, 1))
    xp = jnp.pad(x_nhwc, ((0, 0), (p, p + n_rt * th - h), (p, p), (0, 0)))
    row_idx = (jnp.arange(n_rt) * th)[:, None] + jnp.arange(thk)[None, :]
    xw = xp[:, row_idx]                                   # [N, n_rt, THK, Wp, C]
    xw = xw.reshape(n * n_rt, thk * wp, ic)               # row-major flatten
    xw = jnp.pad(xw, ((0, 0), (0, kw - 1), (0, 0)))       # tail rows for last taps
    xw = xw.astype(jnp.float32)

    # Per-tap weight slices, OC zero-padded to a lane-dense multiple of 128.
    oc_pad = _round_up(oc, 128)
    w_taps = jnp.transpose(w_bar, (2, 3, 1, 0)).reshape(kh * kw, ic, oc)
    w_taps = jnp.pad(w_taps, ((0, 0), (0, 0), (0, oc_pad - oc))).astype(jnp.bfloat16)
    b_pad = jnp.pad(bias.astype(jnp.float32), (0, oc_pad - oc)).reshape(1, oc_pad)

    m_tile = th * wp
    xrows = thk * wp + kw - 1
    n_m = n * n_rt

    kernel = functools.partial(_conv_tap_matmul_kernel, kh, kw, wp, m_tile)
    y = pl.pallas_call(
        kernel,
        out_shape=jax.ShapeDtypeStruct((n_m * m_tile, oc_pad), jnp.float32),
        grid=(n_m,),
        in_specs=[
            smem,                                                      # 1/sigma scalar
            pl.BlockSpec((None, xrows, ic), lambda m: (m, 0, 0)),      # halo tile
            pl.BlockSpec((kh * kw, ic, oc_pad), lambda m: (0, 0, 0)),  # weight (resident)
            pl.BlockSpec((1, oc_pad), lambda m: (0, 0)),               # bias   (resident)
        ],
        out_specs=pl.BlockSpec((m_tile, oc_pad), lambda m: (m, 0)),
        compiler_params=pltpu.CompilerParams(
            dimension_semantics=("parallel",),          # v7x: split tiles across 2 TCs
            vmem_limit_bytes=48 * 1024 * 1024,          # fits v7x's 64 MiB VMEM
        ),
    )(inv_sigma, xw, w_taps, b_pad)

    # Drop pad rows / garbage columns / OC padding, return NCHW.
    y = y.reshape(n, n_rt * th, wp, oc_pad)[:, :h, :w, :oc]
    out = jnp.transpose(y, (0, 3, 1, 2))
    return out, u_new.reshape(height), v_new.reshape(width)


if __name__ == "__main__":
    key = jax.random.PRNGKey(0)
    k_w, k_b, k_u, k_v, k_x = jax.random.split(key, 5)

    # SpectralNorm(nn.Conv2d(4, 8, 3, stride=1, padding=1))
    N, IC, H, W = 2, 4, 16, 16
    OC, KH, KW = 8, 3, 3

    w_bar = jax.random.normal(k_w, (OC, IC, KH, KW), jnp.float32) * 0.1
    bias = jax.random.normal(k_b, (OC,), jnp.float32) * 0.1
    u0 = jax.random.normal(k_u, (OC,), jnp.float32)
    v0 = jax.random.normal(k_v, (IC * KH * KW,), jnp.float32)
    u0 = u0 / (jnp.linalg.norm(u0) + EPS)
    v0 = v0 / (jnp.linalg.norm(v0) + EPS)
    x = jax.random.normal(k_x, (N, IC, H, W), jnp.float32)

    fwd = jax.jit(spectral_norm_conv_forward, static_argnames=("padding",))
    out, u_new, v_new = fwd(x, w_bar, bias, u0, v0, padding=1)
    out = jax.block_until_ready(out)

    # Pure-JAX f32 reference (mirrors _update_u_v + F.conv2d semantics)
    w_mat = w_bar.reshape(OC, -1)
    v_r = w_mat.T @ u0
    v_r = v_r / (jnp.linalg.norm(v_r) + EPS)
    u_r = w_mat @ v_r
    u_r = u_r / (jnp.linalg.norm(u_r) + EPS)
    sigma = u_r @ (w_mat @ v_r)
    w_sn_ref = w_bar / sigma
    out_ref = jax.lax.conv_general_dilated(
        x, w_sn_ref, window_strides=(1, 1), padding=((1, 1), (1, 1)),
        dimension_numbers=("NCHW", "OIHW", "NCHW")) + bias.reshape(1, OC, 1, 1)

    # bf16 MXU inputs -> compare with a correspondingly loose tolerance.
    max_err = jnp.max(jnp.abs(out - out_ref))
    assert out.shape == out_ref.shape
    assert jnp.allclose(out, out_ref, atol=3e-2, rtol=3e-2), f"conv mismatch {max_err}"
    assert jnp.allclose(u_new, u_r, atol=1e-4), "u mismatch"
    assert jnp.allclose(v_new, v_r, atol=1e-4), "v mismatch"
    print("KERNEL_OK")
</pallas_src>

<mosaic_0001>
module attributes {stable_mosaic.version = 11 : i64} {
  func.func @_spectral_norm_kernel(%arg0: memref<8x36xf32, #tpu.memory_space<vmem>>, %arg1: memref<1x8xf32, #tpu.memory_space<vmem>>, %arg2: memref<1x8xf32, #tpu.memory_space<vmem>>, %arg3: memref<1x36xf32, #tpu.memory_space<vmem>>, %arg4: memref<1x1xf32, #tpu.memory_space<vmem>>) attributes {dimension_semantics = [], scalar_prefetch = 0 : i64, scratch_operands = 0 : i64, tpu.core_type = #tpu.core_type<tc>} {
    %c0 = arith.constant 0 : index
    %c0_0 = arith.constant 0 : index
    %0 = vector.load %arg0[%c0, %c0_0] : memref<8x36xf32, #tpu.memory_space<vmem>>, vector<8x36xf32>
    %c0_1 = arith.constant 0 : index
    %c0_2 = arith.constant 0 : index
    %1 = vector.load %arg1[%c0_1, %c0_2] : memref<1x8xf32, #tpu.memory_space<vmem>>, vector<1x8xf32>
    %cst = arith.constant dense<0.000000e+00> : vector<1x36xf32>
    %2 = tpu.matmul %1, %0, %cst {dimension_numbers = #tpu.dot_dimension_numbers<[1], [0], [0], [1], [0, 0, 1, 1], [], []>} : vector<1x8xf32>, vector<8x36xf32>, vector<1x36xf32> -> vector<1x36xf32>
    %3 = arith.mulf %2, %2 : vector<1x36xf32>
    %4 = vector.shape_cast %3 : vector<1x36xf32> to vector<1x1x36xf32>
    %cst_3 = arith.constant dense<0.000000e+00> : vector<1xf32>
    %5 = vector.multi_reduction <add>, %4, %cst_3 [1, 2] : vector<1x1x36xf32> to vector<1xf32>
    %6 = vector.shape_cast %5 : vector<1xf32> to vector<1x1x1xf32>
    %7 = vector.extract %6[0, 0, 0] : f32 from vector<1x1x1xf32>
    %8 = math.sqrt %7 : f32
    %cst_4 = arith.constant 9.99999996E-13 : f32
    %9 = arith.addf %8, %cst_4 : f32
    %10 = vector.broadcast %9 : f32 to vector<1x36xf32>
    %11 = arith.divf %2, %10 : vector<1x36xf32>
    %cst_5 = arith.constant dense<0.000000e+00> : vector<1x8xf32>
    %12 = tpu.matmul %11, %0, %cst_5 {dimension_numbers = #tpu.dot_dimension_numbers<[1], [1], [0], [0], [0, 0, 1, 0], [], []>} : vector<1x36xf32>, vector<8x36xf32>, vector<1x8xf32> -> vector<1x8xf32>
    %13 = arith.mulf %12, %12 : vector<1x8xf32>
    %14 = vector.shape_cast %13 : vector<1x8xf32> to vector<1x1x8xf32>
    %cst_6 = arith.constant dense<0.000000e+00> : vector<1xf32>
    %15 = vector.multi_reduction <add>, %14, %cst_6 [1, 2] : vector<1x1x8xf32> to vector<1xf32>
    %16 = vector.shape_cast %15 : vector<1xf32> to vector<1x1x1xf32>
    %17 = vector.extract %16[0, 0, 0] : f32 from vector<1x1x1xf32>
    %18 = math.sqrt %17 : f32
    %cst_7 = arith.constant 9.99999996E-13 : f32
    %19 = arith.addf %18, %cst_7 : f32
    %20 = vector.broadcast %19 : f32 to vector<1x8xf32>
    %21 = arith.divf %12, %20 : vector<1x8xf32>
    %22 = arith.mulf %21, %12 : vector<1x8xf32>
    %23 = vector.shape_cast %22 : vector<1x8xf32> to vector<1x1x8xf32>
    %cst_8 = arith.constant dense<0.000000e+00> : vector<1xf32>
    %24 = vector.multi_reduction <add>, %23, %cst_8 [1, 2] : vector<1x1x8xf32> to vector<1xf32>
    %25 = vector.shape_cast %24 : vector<1xf32> to vector<1x1x1xf32>
    %26 = vector.extract %25[0, 0, 0] : f32 from vector<1x1x1xf32>
    %27 = vector.broadcast %26 : f32 to vector<1x1xf32>
    %c0_9 = arith.constant 0 : index
    %c0_10 = arith.constant 0 : index
    %28 = vector.load %arg2[%c0_9, %c0_10] : memref<1x8xf32, #tpu.memory_space<vmem>>, vector<1x8xf32>
    tpu.vector_store %arg2[%c0_9, %c0_10], %21 {strides = array<i32>} : memref<1x8xf32, #tpu.memory_space<vmem>>, vector<1x8xf32>,
    %c0_11 = arith.constant 0 : index
    %c0_12 = arith.constant 0 : index
    %29 = vector.load %arg3[%c0_11, %c0_12] : memref<1x36xf32, #tpu.memory_space<vmem>>, vector<1x36xf32>
    tpu.vector_store %arg3[%c0_11, %c0_12], %11 {strides = array<i32>} : memref<1x36xf32, #tpu.memory_space<vmem>>, vector<1x36xf32>,
    %cst_13 = arith.constant 1.000000e+00 : f32
    %30 = vector.broadcast %cst_13 : f32 to vector<1x1xf32>
    %31 = arith.divf %30, %27 : vector<1x1xf32>
    %c0_14 = arith.constant 0 : index
    %c0_15 = arith.constant 0 : index
    %32 = vector.load %arg4[%c0_14, %c0_15] : memref<1x1xf32, #tpu.memory_space<vmem>>, vector<1x1xf32>
    tpu.vector_store %arg4[%c0_14, %c0_15], %31 {strides = array<i32>} : memref<1x1xf32, #tpu.memory_space<vmem>>, vector<1x1xf32>,
    return
  }
}

module attributes {stable_mosaic.version = 11 : i64} {
  func.func @_conv_tap_matmul_kernel(%arg0: i32, %arg1: memref<1x1xf32, #tpu.memory_space<smem>>, %arg2: memref<1x326x4xf32, #tpu.memory_space<vmem>>, %arg3: memref<9x4x128xbf16, #tpu.memory_space<vmem>>, %arg4: memref<1x128xf32, #tpu.memory_space<vmem>>, %arg5: memref<288x128xf32, #tpu.memory_space<vmem>>) attributes {dimension_semantics = [#tpu.dimension_semantics<parallel>], iteration_bounds = array<i64: 2>, scalar_prefetch = 0 : i64, scratch_operands = 0 : i64, tpu.core_type = #tpu.core_type<tc>, window_params = [{transform_indices = @transform_0, window_bounds = array<i64: 1, 1>}, {transform_indices = @transform_1, window_bounds = array<i64: 1, 326, 4>}, {pipeline_mode = #tpu.pipeline_mode<synchronous>, transform_indices = @transform_2, window_bounds = array<i64: 9, 4, 128>}, {pipeline_mode = #tpu.pipeline_mode<synchronous>, transform_indices = @transform_3, window_bounds = array<i64: 1, 128>}, {transform_indices = @transform_4, window_bounds = array<i64: 288, 128>}]} {
    %cst = arith.constant 0.000000e+00 : f32
    %0 = vector.broadcast %cst : f32 to vector<288x128xf32>
    %c0 = arith.constant 0 : index
    %c0_0 = arith.constant 0 : index
    %c0_1 = arith.constant 0 : index
    %1 = vector.load %arg2[%c0, %c0_0, %c0_1] : memref<1x326x4xf32, #tpu.memory_space<vmem>>, vector<1x288x4xf32>
    %2 = vector.shape_cast %1 : vector<1x288x4xf32> to vector<288x4xf32>
    %3 = arith.truncf %2 : vector<288x4xf32> to vector<288x4xbf16>
    %c0_2 = arith.constant 0 : index
    %c0_3 = arith.constant 0 : index
    %c0_4 = arith.constant 0 : index
    %4 = vector.load %arg3[%c0_2, %c0_3, %c0_4] : memref<9x4x128xbf16, #tpu.memory_space<vmem>>, vector<1x4x128xbf16>
    %5 = vector.shape_cast %4 : vector<1x4x128xbf16> to vector<4x128xbf16>
    %cst_5 = arith.constant dense<0.000000e+00> : vector<288x128xf32>
    %6 = tpu.matmul %3, %5, %cst_5 {dimension_numbers = #tpu.dot_dimension_numbers<[1], [0], [0], [1], [0, 0, 1, 1], [], []>} : vector<288x4xbf16>, vector<4x128xbf16>, vector<288x128xf32> -> vector<288x128xf32>
    %7 = arith.addf %0, %6 : vector<288x128xf32>
    %c0_6 = arith.constant 0 : index
    %c1 = arith.constant 1 : index
    %c0_7 = arith.constant 0 : index
    %8 = vector.load %arg2[%c0_6, %c1, %c0_7] : memref<1x326x4xf32, #tpu.memory_space<vmem>>, vector<1x288x4xf32>
    %9 = vector.shape_cast %8 : vector<1x288x4xf32> to vector<288x4xf32>
    %10 = arith.truncf %9 : vector<288x4xf32> to vector<288x4xbf16>
    %c1_8 = arith.constant 1 : index
    %c0_9 = arith.constant 0 : index
    %c0_10 = arith.constant 0 : index
    %11 = vector.load %arg3[%c1_8, %c0_9, %c0_10] : memref<9x4x128xbf16, #tpu.memory_space<vmem>>, vector<1x4x128xbf16>
    %12 = vector.shape_cast %11 : vector<1x4x128xbf16> to vector<4x128xbf16>
    %cst_11 = arith.constant dense<0.000000e+00> : vector<288x128xf32>
    %13 = tpu.matmul %10, %12, %cst_11 {dimension_numbers = #tpu.dot_dimension_numbers<[1], [0], [0], [1], [0, 0, 1, 1], [], []>} : vector<288x4xbf16>, vector<4x128xbf16>, vector<288x128xf32> -> vector<288x128xf32>
    %14 = arith.addf %7, %13 : vector<288x128xf32>
    %c0_12 = arith.constant 0 : index
    %c2 = arith.constant 2 : index
    %c0_13 = arith.constant 0 : index
    %15 = vector.load %arg2[%c0_12, %c2, %c0_13] : memref<1x326x4xf32, #tpu.memory_space<vmem>>, vector<1x288x4xf32>
    %16 = vector.shape_cast %15 : vector<1x288x4xf32> to vector<288x4xf32>
    %17 = arith.truncf %16 : vector<288x4xf32> to vector<288x4xbf16>
    %c2_14 = arith.constant 2 : index
    %c0_15 = arith.constant 0 : index
    %c0_16 = arith.constant 0 : index
    %18 = vector.load %arg3[%c2_14, %c0_15, %c0_16] : memref<9x4x128xbf16, #tpu.memory_space<vmem>>, vector<1x4x128xbf16>
    %19 = vector.shape_cast %18 : vector<1x4x128xbf16> to vector<4x128xbf16>
    %cst_17 = arith.constant dense<0.000000e+00> : vector<288x128xf32>
    %20 = tpu.matmul %17, %19, %cst_17 {dimension_numbers = #tpu.dot_dimension_numbers<[1], [0], [0], [1], [0, 0, 1, 1], [], []>} : vector<288x4xbf16>, vector<4x128xbf16>, vector<288x128xf32> -> vector<288x128xf32>
    %21 = arith.addf %14, %20 : vector<288x128xf32>
    %c0_18 = arith.constant 0 : index
    %c18 = arith.constant 18 : index
    %c0_19 = arith.constant 0 : index
    %22 = vector.load %arg2[%c0_18, %c18, %c0_19] : memref<1x326x4xf32, #tpu.memory_space<vmem>>, vector<1x288x4xf32>
    %23 = vector.shape_cast %22 : vector<1x288x4xf32> to vector<288x4xf32>
    %24 = arith.truncf %23 : vector<288x4xf32> to vector<288x4xbf16>
    %c3 = arith.constant 3 : index
    %c0_20 = arith.constant 0 : index
    %c0_21 = arith.constant 0 : index
    %25 = vector.load %arg3[%c3, %c0_20, %c0_21] : memref<9x4x128xbf16, #tpu.memory_space<vmem>>, vector<1x4x128xbf16>
    %26 = vector.shape_cast %25 : vector<1x4x128xbf16> to vector<4x128xbf16>
    %cst_22 = arith.constant dense<0.000000e+00> : vector<288x128xf32>
    %27 = tpu.matmul %24, %26, %cst_22 {dimension_numbers = #tpu.dot_dimension_numbers<[1], [0], [0], [1], [0, 0, 1, 1], [], []>} : vector<288x4xbf16>, vector<4x128xbf16>, vector<288x128xf32> -> vector<288x128xf32>
    %28 = arith.addf %21, %27 : vector<288x128xf32>
    %c0_23 = arith.constant 0 : index
    %c19 = arith.constant 19 : index
    %c0_24 = arith.constant 0 : index
    %29 = vector.load %arg2[%c0_23, %c19, %c0_24] : memref<1x326x4xf32, #tpu.memory_space<vmem>>, vector<1x288x4xf32>
    %30 = vector.shape_cast %29 : vector<1x288x4xf32> to vector<288x4xf32>
    %31 = arith.truncf %30 : vector<288x4xf32> to vector<288x4xbf16>
    %c4 = arith.constant 4 : index
    %c0_25 = arith.constant 0 : index
    %c0_26 = arith.constant 0 : index
    %32 = vector.load %arg3[%c4, %c0_25, %c0_26] : memref<9x4x128xbf16, #tpu.memory_space<vmem>>, vector<1x4x128xbf16>
    %33 = vector.shape_cast %32 : vector<1x4x128xbf16> to vector<4x128xbf16>
    %cst_27 = arith.constant dense<0.000000e+00> : vector<288x128xf32>
    %34 = tpu.matmul %31, %33, %cst_27 {dimension_numbers = #tpu.dot_dimension_numbers<[1], [0], [0], [1], [0, 0, 1, 1], [], []>} : vector<288x4xbf16>, vector<4x128xbf16>, vector<288x128xf32> -> vector<288x128xf32>
    %35 = arith.addf %28, %34 : vector<288x128xf32>
    %c0_28 = arith.constant 0 : index
    %c20 = arith.constant 20 : index
    %c0_29 = arith.constant 0 : index
    %36 = vector.load %arg2[%c0_28, %c20, %c0_29] : memref<1x326x4xf32, #tpu.memory_space<vmem>>, vector<1x288x4xf32>
    %37 = vector.shape_cast %36 : vector<1x288x4xf32> to vector<288x4xf32>
    %38 = arith.truncf %37 : vector<288x4xf32> to vector<288x4xbf16>
    %c5 = arith.constant 5 : index
    %c0_30 = arith.constant 0 : index
    %c0_31 = arith.constant 0 : index
    %39 = vector.load %arg3[%c5, %c0_30, %c0_31] : memref<9x4x128xbf16, #tpu.memory_space<vmem>>, vector<1x4x128xbf16>
    %40 = vector.shape_cast %39 : vector<1x4x128xbf16> to vector<4x128xbf16>
    %cst_32 = arith.constant dense<0.000000e+00> : vector<288x128xf32>
    %41 = tpu.matmul %38, %40, %cst_32 {dimension_numbers = #tpu.dot_dimension_numbers<[1], [0], [0], [1], [0, 0, 1, 1], [], []>} : vector<288x4xbf16>, vector<4x128xbf16>, vector<288x128xf32> -> vector<288x128xf32>
    %42 = arith.addf %35, %41 : vector<288x128xf32>
    %c0_33 = arith.constant 0 : index
    %c36 = arith.constant 36 : index
    %c0_34 = arith.constant 0 : index
    %43 = vector.load %arg2[%c0_33, %c36, %c0_34] : memref<1x326x4xf32, #tpu.memory_space<vmem>>, vector<1x288x4xf32>
    %44 = vector.shape_cast %43 : vector<1x288x4xf32> to vector<288x4xf32>
    %45 = arith.truncf %44 : vector<288x4xf32> to vector<288x4xbf16>
    %c6 = arith.constant 6 : index
    %c0_35 = arith.constant 0 : index
    %c0_36 = arith.constant 0 : index
    %46 = vector.load %arg3[%c6, %c0_35, %c0_36] : memref<9x4x128xbf16, #tpu.memory_space<vmem>>, vector<1x4x128xbf16>
    %47 = vector.shape_cast %46 : vector<1x4x128xbf16> to vector<4x128xbf16>
    %cst_37 = arith.constant dense<0.000000e+00> : vector<288x128xf32>
    %48 = tpu.matmul %45, %47, %cst_37 {dimension_numbers = #tpu.dot_dimension_numbers<[1], [0], [0], [1], [0, 0, 1, 1], [], []>} : vector<288x4xbf16>, vector<4x128xbf16>, vector<288x128xf32> -> vector<288x128xf32>
    %49 = arith.addf %42, %48 : vector<288x128xf32>
    %c0_38 = arith.constant 0 : index
    %c37 = arith.constant 37 : index
    %c0_39 = arith.constant 0 : index
    %50 = vector.load %arg2[%c0_38, %c37, %c0_39] : memref<1x326x4xf32, #tpu.memory_space<vmem>>, vector<1x288x4xf32>
    %51 = vector.shape_cast %50 : vector<1x288x4xf32> to vector<288x4xf32>
    %52 = arith.truncf %51 : vector<288x4xf32> to vector<288x4xbf16>
    %c7 = arith.constant 7 : index
    %c0_40 = arith.constant 0 : index
    %c0_41 = arith.constant 0 : index
    %53 = vector.load %arg3[%c7, %c0_40, %c0_41] : memref<9x4x128xbf16, #tpu.memory_space<vmem>>, vector<1x4x128xbf16>
    %54 = vector.shape_cast %53 : vector<1x4x128xbf16> to vector<4x128xbf16>
    %cst_42 = arith.constant dense<0.000000e+00> : vector<288x128xf32>
    %55 = tpu.matmul %52, %54, %cst_42 {dimension_numbers = #tpu.dot_dimension_numbers<[1], [0], [0], [1], [0, 0, 1, 1], [], []>} : vector<288x4xbf16>, vector<4x128xbf16>, vector<288x128xf32> -> vector<288x128xf32>
    %56 = arith.addf %49, %55 : vector<288x128xf32>
    %c0_43 = arith.constant 0 : index
    %c38 = arith.constant 38 : index
    %c0_44 = arith.constant 0 : index
    %57 = vector.load %arg2[%c0_43, %c38, %c0_44] : memref<1x326x4xf32, #tpu.memory_space<vmem>>, vector<1x288x4xf32>
    %58 = vector.shape_cast %57 : vector<1x288x4xf32> to vector<288x4xf32>
    %59 = arith.truncf %58 : vector<288x4xf32> to vector<288x4xbf16>
    %c8 = arith.constant 8 : index
    %c0_45 = arith.constant 0 : index
    %c0_46 = arith.constant 0 : index
    %60 = vector.load %arg3[%c8, %c0_45, %c0_46] : memref<9x4x128xbf16, #tpu.memory_space<vmem>>, vector<1x4x128xbf16>
    %61 = vector.shape_cast %60 : vector<1x4x128xbf16> to vector<4x128xbf16>
    %cst_47 = arith.constant dense<0.000000e+00> : vector<288x128xf32>
    %62 = tpu.matmul %59, %61, %cst_47 {dimension_numbers = #tpu.dot_dimension_numbers<[1], [0], [0], [1], [0, 0, 1, 1], [], []>} : vector<288x4xbf16>, vector<4x128xbf16>, vector<288x128xf32> -> vector<288x128xf32>
    %63 = arith.addf %56, %62 : vector<288x128xf32>
    %c0_48 = arith.constant 0 : index
    %c0_49 = arith.constant 0 : index
    %64 = memref.load %arg1[%c0_48, %c0_49] : memref<1x1xf32, #tpu.memory_space<smem>>
    %65 = vector.broadcast %64 : f32 to vector<288x128xf32>
    %66 = arith.mulf %63, %65 : vector<288x128xf32>
    %c0_50 = arith.constant 0 : index
    %c0_51 = arith.constant 0 : index
    %67 = vector.load %arg4[%c0_50, %c0_51] : memref<1x128xf32, #tpu.memory_space<vmem>>, vector<1x128xf32>
    %68 = vector.broadcast %67 : vector<1x128xf32> to vector<288x128xf32>
    %69 = arith.addf %66, %68 : vector<288x128xf32>
    %c0_52 = arith.constant 0 : index
    %c0_53 = arith.constant 0 : index
    %70 = vector.load %arg5[%c0_52, %c0_53] : memref<288x128xf32, #tpu.memory_space<vmem>>, vector<288x128xf32>
    tpu.vector_store %arg5[%c0_52, %c0_53], %69 {strides = array<i32>} : memref<288x128xf32, #tpu.memory_space<vmem>>, vector<288x128xf32>,
    return
  }
  func.func @transform_0(%arg0: i32) -> (i32, i32) {
    %c0_i32 = arith.constant 0 : i32
    %c0_i32_0 = arith.constant 0 : i32
    %c0_i32_1 = arith.constant 0 : i32
    return %c0_i32, %c0_i32_0 : i32, i32
  }
  func.func @transform_1(%arg0: i32) -> (i32, i32, i32) {
    %c0_i32 = arith.constant 0 : i32
    %c0_i32_0 = arith.constant 0 : i32
    %c0_i32_1 = arith.constant 0 : i32
    return %arg0, %c0_i32, %c0_i32_0 : i32, i32, i32
  }
  func.func @transform_2(%arg0: i32) -> (i32, i32, i32) {
    %c0_i32 = arith.constant 0 : i32
    %c0_i32_0 = arith.constant 0 : i32
    %c0_i32_1 = arith.constant 0 : i32
    %c0_i32_2 = arith.constant 0 : i32
    return %c0_i32, %c0_i32_0, %c0_i32_1 : i32, i32, i32
  }
  func.func @transform_3(%arg0: i32) -> (i32, i32) {
    %c0_i32 = arith.constant 0 : i32
    %c0_i32_0 = arith.constant 0 : i32
    %c0_i32_1 = arith.constant 0 : i32
    return %c0_i32, %c0_i32_0 : i32, i32
  }
  func.func @transform_4(%arg0: i32) -> (i32, i32) {
    %c0_i32 = arith.constant 0 : i32
    %c0_i32_0 = arith.constant 0 : i32
    return %arg0, %c0_i32 : i32, i32
  }
}

</mosaic_0001>

<bundles_post_ra>
// kernel: spectral_norm_conv_forward.2
= control target key start
LH: loop header
LB: loop body
LE: loop exit
PB: predicated region body
PF: predicated region fallthrough
CT: control target
= control target key end

     0   :  { %10 = vsyncpa [#allocation3], 0  ;;  %vm18_vm0 = vcmask 64512   ;;  %s385_s0 = inlined_call_operand.vmem [shape: f32[8,36], index: 0, kind: input, shape index: {}]   ;;  %s386_s1 = inlined_call_operand.vmem [shape: f32[1,8], index: 1, kind: input, shape index: {}]   ;;  %s387_s2 = inlined_call_operand.hbm [shape: f32[1,8], index: 2, kind: output, shape index: {0}]   ;;  %s388_s3 = inlined_call_operand.hbm [shape: f32[1,36], index: 3, kind: output, shape index: {1}]   ;;  %s389_s4 = inlined_call_operand.hbm [shape: f32[1,1], index: 4, kind: output, shape index: {2}]  }
   0x1   :  { %v16_v0 = vld [vmem:[%s385_s0] sm:$0xff] }
   0x2   :  { %v17_v1 = vld [vmem:[%s386_s1] sm:$0x1] }
   0x3   :  { %11 = vsyncpa [#allocation5], 0  ;;  %37 = vmatpush.msra.mxu0 %v16_v0  ;;  %vm43_vm1 = vcmask 286720   ;;  %vm85_vm4 = vcmask 293888   ;;  %vm113_vm9 = vcmask 57344   ;;  %s204_s25 = sshll.u32 %s388_s3, 4  ;;  %s205_s25 = int_to_ptr.hbm [resolvable:$true] %s204_s25 }
   0x4   :  { %233 = vmatmul.msk.f32.vlgmr.msra.gmra.mxu0 %vm18_vm0, %v17_v1  ;;  %234 = vmatpush.xpose.msk.msra.mxu1 %vm85_vm4, %v16_v0  ;;  %s335_s26 = smov [#allocation4]   ;;  %s336_s28 = smov [#allocation2]  }
   0x5   :  { %s202_s27 = sshll.u32 %s335_s26, 4  ;;  %s191_s29 = sshll.u32 %s336_s28, 4  ;;  %s203_s27 = int_to_ptr.vmem [resolvable:$true] %s202_s27  ;;  %s192_s29 = int_to_ptr.vmem [resolvable:$true] %s191_s29 }
   0x6   :  { %s193_s6 = sshll.u32 %s387_s2, 4  ;;  %s337_s2 = smov [#allocation6]   ;;  %s194_s6 = int_to_ptr.hbm [resolvable:$true] %s193_s6 }
   0x7   :  { %s213_s7 = sshll.u32 %s337_s2, 4  ;;  %s215_s10 = sshll.u32 %s389_s4, 4  ;;  %s214_s7 = int_to_ptr.vmem [resolvable:$true] %s213_s7  ;;  %s216_s10 = int_to_ptr.hbm [resolvable:$true] %s215_s10 }
  0x81   :  { %v39_v2 = vpop.f32.mrf.mxu0 }
  0x82   :  { %v42_v3 = vmul.f32 %v39_v2, %v39_v2 }
  0x84   :  { %v44_v4 = vsel %vm43_vm1, %v42_v3, 0.0 }
  0x85   :  { %45 = vadd.xlane.f32.xlu0 %v44_v4 }
  0xf8   :  { %v46_v5 = vpop.xlane.xlu0 %45 }
  0xf9   :  { %v47_v6 = vrot.slane %v46_v5, 4 }
  0xfb   :  { %v48_v7 = vadd.f32 %v47_v6, %v46_v5 }
  0xfd   :  { %v49_v8 = vrot.slane %v48_v7, 2 }
  0xff   :  { %v50_v9 = vadd.f32 %v49_v8, %v48_v7 }
 0x101   :  { %v51_v10 = vrot.slane %v50_v9, 1 }
 0x103   :  { %v52_v11 = vadd.f32 %v51_v10, %v50_v9 }
 0x105   :  { %236 = vpush %v52_v11 }
 0x136   :  { %s237_s0 = spop %236 }
 0x137   :  { %v54_v12 = vstv %s237_s0 }
 0x138   :  { %249 = vrsqrt.f32 %v54_v12  ;;  %vm62_vm2 = vcmp.eq.f32.partialorder %v54_v12, inf  ;;  %v65_v20 = vand.u32 2147483648, %v54_v12  ;;  %vm64_vm3 = vcmp.eq.f32.partialorder %v54_v12, 0.0 }
 0x13e   :  { %v250_v13 = vpop.eup %249 }
 0x13f   :  { %v56_v14 = vmul.f32 %v250_v13, %v54_v12 }
 0x141   :  { %v57_v15 = vmul.f32 %v250_v13, %v56_v14 }
 0x143   :  { %v58_v16 = vmul.f32 0.5, %v57_v15 }
 0x145   :  { %v59_v17 = vsub.f32 1.5, %v58_v16 }
 0x147   :  { %v60_v18 = vmul.f32 %v250_v13, %v59_v17 }
 0x149   :  { %v61_v19 = vmul.f32 %v60_v18, %v54_v12 }
 0x14b   :  { %v63_v21 = vsel %vm62_vm2, %v54_v12, %v61_v19 }
 0x14c   :  { %v66_v22 = vsel %vm64_vm3, %v65_v20, %v63_v21  ;;  %vm184_vm3 = vcmask 0  }
 0x14d   :  { %238 = vpush %v66_v22 }
 0x17e   :  { %s239_s1 = spop %238 }
 0x17f   :  { %s68_s19 = sadd.f32 1e-12, %s239_s1 }
 0x181   :  { %v69_v23 = vstv %s68_s19 }
 0x182   :  { %251 = vrcp.f32 %v69_v23  ;;  %v81_v27 = vand.u32 2147483648, %v69_v23  ;;  %v79_v29 = vand.u32 2147483647, %v69_v23  ;;  %vm75_vm6 = vweird.f32 %v69_v23 }
 0x184   :  { %v82_v31 = vor.u32 1.1754944e-38, %v81_v27  ;;  %vm80_vm8 = vcmp.eq.f32.partialorder %v79_v29, 8.507059e+37 }
 0x188   :  { %v252_v24 = vpop.eup %251 }
 0x189   :  { %v71_v25 = vmul.f32 %v252_v24, %v69_v23  ;;  %vm76_vm5 = vweird.f32 %v252_v24 }
 0x18a   :  { %vm77_vm7 = vmor %vm75_vm6, %vm76_vm5 }
 0x18b   :  { %v72_v26 = vsub.f32 1.0, %v71_v25 }
 0x18d   :  { %v73_v28 = vmul.f32 %v252_v24, %v72_v26 }
 0x18f   :  { %v74_v30 = vadd.f32 %v252_v24, %v73_v28 }
 0x191   :  { %v78_v32 = vsel %vm77_vm7, %v252_v24, %v74_v30 }
 0x192   :  { %v83_v33 = vsel %vm80_vm8, %v82_v31, %v78_v32 }
 0x193   :  { %v84_v34 = vmul.f32 %v83_v33, %v39_v2 }
 0x195   :  { %235 = vmatmul.msk.f32.vlgmr.msra.gmra.mxu1 %vm85_vm4, %v84_v34  ;;  %168 = vst.msk [vmem:[#allocation4] sm:$0x1] %vm43_vm1, %v84_v34 }
 0x196   :  { %207 = dma.vmem_to_hbm [thread:$0]  %s203_s27, 16, %s205_s25, [#allocation5]  }
 0x212   :  { %v109_v35 = vpop.f32.mrf.mxu1 }
 0x213   :  { %v112_v36 = vmul.f32 %v109_v35, %v109_v35 }
 0x215   :  { %v114_v37 = vsel %vm113_vm9, %v112_v36, 0.0 }
 0x216   :  { %115 = vadd.xlane.f32.xlu0 %v114_v37 }
 0x289   :  { %v116_v38 = vpop.xlane.xlu0 %115 }
 0x28a   :  { %v117_v39 = vrot.slane %v116_v38, 4 }
 0x28c   :  { %v118_v40 = vadd.f32 %v117_v39, %v116_v38 }
 0x28e   :  { %v119_v41 = vrot.slane %v118_v40, 2 }
 0x290   :  { %v120_v42 = vadd.f32 %v119_v41, %v118_v40 }
 0x292   :  { %v121_v43 = vrot.slane %v120_v42, 1 }
 0x294   :  { %v122_v44 = vadd.f32 %v121_v43, %v120_v42 }
 0x296   :  { %240 = vpush %v122_v44 }
 0x2c7   :  { %s241_s20 = spop %240 }
 0x2c8   :  { %v124_v45 = vstv %s241_s20 }
 0x2c9   :  { %253 = vrsqrt.f32 %v124_v45  ;;  %vm132_vm10 = vcmp.eq.f32.partialorder %v124_v45, inf  ;;  %v135_v53 = vand.u32 2147483648, %v124_v45  ;;  %vm134_vm11 = vcmp.eq.f32.partialorder %v124_v45, 0.0 }
 0x2cf   :  { %v254_v46 = vpop.eup %253 }
 0x2d0   :  { %v126_v47 = vmul.f32 %v254_v46, %v124_v45 }
 0x2d2   :  { %v127_v48 = vmul.f32 %v254_v46, %v126_v47 }
 0x2d4   :  { %v128_v49 = vmul.f32 0.5, %v127_v48 }
 0x2d6   :  { %v129_v50 = vsub.f32 1.5, %v128_v49 }
 0x2d8   :  { %v130_v51 = vmul.f32 %v254_v46, %v129_v50 }
 0x2da   :  { %v131_v52 = vmul.f32 %v130_v51, %v124_v45 }
 0x2dc   :  { %v133_v54 = vsel %vm132_vm10, %v124_v45, %v131_v52 }
 0x2dd   :  { %v136_v55 = vsel %vm134_vm11, %v135_v53, %v133_v54 }
 0x2de   :  { %242 = vpush %v136_v55 }
 0x30f   :  { %s243_s21 = spop %242 }
 0x310   :  { %s138_s22 = sadd.f32 1e-12, %s243_s21 }
 0x312   :  { %v139_v56 = vstv %s138_s22 }
 0x313   :  { %255 = vrcp.f32 %v139_v56  ;;  %v151_v60 = vand.u32 2147483648, %v139_v56  ;;  %v149_v62 = vand.u32 2147483647, %v139_v56  ;;  %vm145_vm13 = vweird.f32 %v139_v56 }
 0x315   :  { %v152_v0 = vor.u32 1.1754944e-38, %v151_v60  ;;  %vm150_vm15 = vcmp.eq.f32.partialorder %v149_v62, 8.507059e+37 }
 0x319   :  { %v256_v57 = vpop.eup %255 }
 0x31a   :  { %v141_v58 = vmul.f32 %v256_v57, %v139_v56  ;;  %vm146_vm12 = vweird.f32 %v256_v57 }
 0x31b   :  { %vm147_vm14 = vmor %vm145_vm13, %vm146_vm12 }
 0x31c   :  { %v142_v59 = vsub.f32 1.0, %v141_v58 }
 0x31e   :  { %v143_v61 = vmul.f32 %v256_v57, %v142_v59 }
 0x320   :  { %v144_v63 = vadd.f32 %v256_v57, %v143_v61 }
 0x322   :  { %v148_v1 = vsel %vm147_vm14, %v256_v57, %v144_v63 }
 0x323   :  { %v153_v2 = vsel %vm150_vm15, %v152_v0, %v148_v1 }
 0x324   :  { %v154_v3 = vmul.f32 %v153_v2, %v109_v35 }
 0x326   :  { %v155_v4 = vmul.f32 %v154_v3, %v109_v35  ;;  %167 = vst.msk [vmem:[#allocation2] sm:$0x1] %vm113_vm9, %v154_v3 }
 0x327   :  { %196 = dma.vmem_to_hbm [thread:$0]  %s192_s29, 16, %s194_s6, [#allocation3]  }
 0x328   :  { %v156_v5 = vsel %vm113_vm9, %v155_v4, 0.0 }
 0x329   :  { %157 = vadd.xlane.f32.xlu1 %v156_v5 }
 0x39c   :  { %v158_v6 = vpop.xlane.xlu1 %157 }
 0x39d   :  { %v159_v7 = vrot.slane %v158_v6, 4 }
 0x39f   :  { %v160_v8 = vadd.f32 %v159_v7, %v158_v6 }
 0x3a1   :  { %v161_v9 = vrot.slane %v160_v8, 2 }
 0x3a3   :  { %v162_v10 = vadd.f32 %v161_v9, %v160_v8 }
 0x3a5   :  { %v163_v11 = vrot.slane %v162_v10, 1 }
 0x3a7   :  { %v164_v12 = vadd.f32 %v163_v11, %v162_v10 }
 0x3a9   :  { %244 = vpush %v164_v12 }
 0x3da   :  { %s245_s3 = spop %244 }
 0x3db   :  { %v166_v13 = vstv %s245_s3 }
 0x3dc   :  { %257 = vrcp.f32 %v166_v13  ;;  %v180_v17 = vand.u32 2147483648, %v166_v13  ;;  %v178_v19 = vand.u32 2147483647, %v166_v13  ;;  %vm174_vm1 = vweird.f32 %v166_v13 }
 0x3de   :  { %v181_v21 = vor.u32 1.1754944e-38, %v180_v17  ;;  %vm179_vm4 = vcmp.eq.f32.partialorder %v178_v19, 8.507059e+37 }
 0x3e2   :  { %v258_v14 = vpop.eup %257 }
 0x3e3   :  { %v170_v15 = vmul.f32 %v258_v14, %v166_v13  ;;  %vm175_vm0 = vweird.f32 %v258_v14 }
 0x3e4   :  { %vm176_vm2 = vmor %vm174_vm1, %vm175_vm0 }
 0x3e5   :  { %v171_v16 = vsub.f32 1.0, %v170_v15 }
 0x3e7   :  { %v172_v18 = vmul.f32 %v258_v14, %v171_v16 }
 0x3e9   :  { %v173_v20 = vadd.f32 %v258_v14, %v172_v18 }
 0x3eb   :  { %v177_v22 = vsel %vm176_vm2, %v258_v14, %v173_v20 }
 0x3ec   :  { %v182_v23 = vsel %vm179_vm4, %v181_v21, %v177_v22 }
 0x3ed   :  { %185 = vst.msk [vmem:[#allocation6] sm:$0x1] %vm184_vm3, %v182_v23 }
 0x3ee   :  { %218 = dma.vmem_to_hbm [thread:$0]  %s214_s7, 16, %s216_s10, [#allocation5]  }
 0x3ef   :  { %331 = dma.done.wait [#allocation3], 16  }
 0x3f0   :  { %332 = vsyncadd [#allocation3], 4294967280 }
 0x3f1   :  { %333 = dma.done.wait [#allocation5], 32  }
 0x3f2   :  { %334 = vsyncadd [#allocation5], 4294967264 }
 0x3f3   :  { %231 = vsyncpa [#allocation3], 1 }
 0x3f4   :  { %232 = vsyncpa [#allocation5], 1 }

// kernel: spectral_norm_conv_forward.3
= control target key start
LH: loop header
LB: loop body
LE: loop exit
PB: predicated region body
PF: predicated region fallthrough
CT: control target
= control target key end

     0   :  { %s2760_s17 = smov 0   ;;  %s3670_s0 = inlined_call_operand.<no memory space> [shape: f32[1,1], index: 0, kind: input, shape index: {}]   ;;  %s3671_s1 = inlined_call_operand.vmem [shape: f32[2,326,4], index: 1, kind: input, shape index: {}]   ;;  %s3672_s2 = inlined_call_operand.vmem [shape: bf16[9,4,128], index: 2, kind: input, shape index: {}]   ;;  %s3673_s3 = inlined_call_operand.vmem [shape: f32[1,128], index: 3, kind: input, shape index: {}]   ;;  %s3674_s4 = inlined_call_operand.vmem [shape: f32[576,128], index: 4, kind: output, shape index: {}]  }
   0x1   :  { %9 = sst [smem:[#allocation2]] %s3670_s0 }
   0x2 LB: > { %s2766_s18 = sadd.s32 4294967295, %s2730_s17   ;;  %p2536_p0 = scmp.ge.s32.totalorder %s2730_s17, 1  ;;  %s2730_s17 = sphi %s2760_s17, %s15_s17  }
   0x3   : > { %p163_p1 = scmp.lt.s32.totalorder %s2730_s17, 3 }
   0x5   : > { %p164_p2 = pnand %p2536_p0, %p163_p1 }
   0x6   : > { %p189_p3 = scmp.lt.s32.totalorder (!%p164_p2), %s2766_s18, 1  ;;  %s194_s15 = smul.u32 (!%p164_p2), 36, %s2766_s18 }
   0x7   : > { %167 = sbr.rel (%p164_p2) target bundleno = 812 (0x32c), region = 36  ;;  %s2362_s16 = sld [smem:[#allocation2]] (!%p164_p2) }
   0x8   : > { %p195_p4 = scmp.lt.s32.totalorder (!%p164_p2), %s194_s15, 71 }
   0xc   : > { %v2539_v0 = vld [vmem:[%s3672_s2 + $0x2] sm:$0x3]  ;;  %vm367_vm0 = vcmask 1041408   ;;  %v2576_v2 = vld [vmem:[%s3672_s2 + $0x4] sm:$0x3]  ;;  %s190_s24 = scalar_select %p189_p3, %s2766_s18, 1 }
   0xd   : > { %v369_v1 = vsel %vm367_vm0, %v2539_v0, 0  ;;  %v255_v3 = vld [vmem:[%s3672_s2] sm:$0x3]  ;;  %v737_v4 = vsel %vm367_vm0, %v2576_v2, 0  ;;  %v2614_v6 = vld [vmem:[%s3672_s2 + $0x8] sm:$0x3] }
   0xe   : > { %2711 = vmatpush.bf16.msra.mxu1 %v369_v1  ;;  %2712 = vmatpush.bf16.msra.mxu2 %v369_v1  ;;  %v525_v5 = vsel %vm367_vm0, %v255_v3, 0  ;;  %v1233_v7 = vsel %vm367_vm0, %v2614_v6, 0  ;;  %s2714_s27 = smul.u32 328, %s190_s24  ;;  %vm312_vm1 = vcmask 31744   ;;  %v2595_v20 = vld [vmem:[%s3672_s2 + $0x6] sm:$0x3] }
   0xf   : > { %378 = vmatpush.bf16.msra.mxu0 %v369_v1  ;;  %2713 = vmatpush.bf16.msra.mxu3 %v369_v1  ;;  %v985_v21 = vsel %vm367_vm0, %v2595_v20, 0  ;;  %v2652_v58 = vld [vmem:[%s3672_s2 + $0xc] sm:$0x3]  ;;  %v2671_v59 = vld [vmem:[%s3672_s2 + $0xe] sm:$0x3]  ;;  %s3676_s15 = smov (!%p195_p4, %s194_s15), 71 }
  0x10   : > { %s2791_s30 = scalar_lea.vmem %s3671_s1, %s2714_s27  ;;  %v2633_v60 = vld [vmem:[%s3672_s2 + $0xa] sm:$0x3]  ;;  %v1729_v61 = vsel %vm367_vm0, %v2652_v58, 0  ;;  %v1977_v62 = vsel %vm367_vm0, %v2671_v59, 0  ;;  %v2690_v0 = vld [vmem:[%s3672_s2 + $0x10] sm:$0x3] }
  0x11   : > { %v266_v8 = vld [vmem:[%s2791_s30 + $0x51] sm:$0xff]  ;;  %v267_v9 = vld [vmem:[%s2791_s30 + $0x59] sm:$0xff]  ;;  %v276_v10 = vld [vmem:[%s2791_s30 + $0xa1] sm:$0xff]  ;;  %v1481_v63 = vsel %vm367_vm0, %v2633_v60, 0  ;;  %v2225_v1 = vsel %vm367_vm0, %v2690_v0, 0  ;;  %s2538_s18 = sshll.u32 %s3676_s15, 3 }
  0x12   : > { %746 = vmatpush.bf16.msrb.mxu2 %v737_v4  ;;  %534 = vmatpush.bf16.msrb.mxu1 %v525_v5  ;;  %v297_v11 = vpack.c.bf16 %v267_v9, %v266_v8  ;;  %v277_v12 = vld [vmem:[%s2791_s30 + $0xa9] sm:$0xff]  ;;  %v256_v13 = vld [vmem:[%s2791_s30 + $0x1] sm:$0xff]  ;;  %v286_v17 = vld [vmem:[%s2791_s30 + $0xf1] sm:$0xff]  ;;  %s3401_s22 = scalar_lea.vmem %s3674_s4, %s2538_s18 }
  0x13   : > { %1242 = vmatpush.bf16.msrb.mxu0 %v1233_v7  ;;  %v257_v14 = vld [vmem:[%s2791_s30 + $0x9] sm:$0xff]  ;;  %v302_v15 = vpack.c.bf16 %v277_v12, %v276_v10  ;;  %v287_v18 = vld [vmem:[%s2791_s30 + $0xf9] sm:$0xff]  ;;  %994 = vmatpush.bf16.msrb.mxu3 %v985_v21  ;;  %v268_v22 = vld [vmem:[%s2791_s30 + $0x61] sm:$0xff] }
  0x14   : > { %v292_v16 = vpack.c.bf16 %v257_v14, %v256_v13  ;;  %2545 = vmatmul.msk.bf16.vlgmr.msra.gmra.mxu1 %vm312_vm1, %v297_v11  ;;  %v307_v19 = vpack.c.bf16 %v287_v18, %v286_v17  ;;  %v269_v23 = vld [vmem:[%s2791_s30 + $0x69] sm:$0xff]  ;;  %v278_v24 = vld [vmem:[%s2791_s30 + $0xb1] sm:$0xff]  ;;  %v279_v25 = vld [vmem:[%s2791_s30 + $0xb9] sm:$0xff] }
  0x15   : > { %2550 = vmatmul.msk.bf16.vlgmr.msra.gmra.mxu2 %vm312_vm1, %v302_v15  ;;  %v258_v26 = vld [vmem:[%s2791_s30 + $0x11] sm:$0xff]  ;;  %v259_v27 = vld [vmem:[%s2791_s30 + $0x19] sm:$0xff]  ;;  %v298_v28 = vpack.c.bf16 %v269_v23, %v268_v22  ;;  %v303_v29 = vpack.c.bf16 %v279_v25, %v278_v24  ;;  %v288_v31 = vld [vmem:[%s2791_s30 + $0x101] sm:$0xff] }
  0x16   : > { %2540 = vmatmul.msk.bf16.vlgmr.msra.gmra.mxu0 %vm312_vm1, %v292_v16  ;;  %2555 = vmatmul.msk.bf16.vlgmr.msra.gmra.mxu3 %vm312_vm1, %v307_v19  ;;  %v293_v30 = vpack.c.bf16 %v259_v27, %v258_v26  ;;  %v289_v32 = vld [vmem:[%s2791_s30 + $0x109] sm:$0xff]  ;;  %v270_v34 = vld [vmem:[%s2791_s30 + $0x71] sm:$0xff]  ;;  %v271_v35 = vld [vmem:[%s2791_s30 + $0x79] sm:$0xff] }
  0x17   : > { %v308_v33 = vpack.c.bf16 %v289_v32, %v288_v31  ;;  %v280_v36 = vld [vmem:[%s2791_s30 + $0xc1] sm:$0xff]  ;;  %v281_v37 = vld [vmem:[%s2791_s30 + $0xc9] sm:$0xff]  ;;  %v299_v40 = vpack.c.bf16 %v271_v35, %v270_v34  ;;  %v290_v43 = vld [vmem:[%s2791_s30 + $0x111] sm:$0xff]  ;;  %1738 = vmatpush.bf16.msra.mxu2 %v1729_v61  ;;  %1986 = vmatpush.bf16.msra.mxu3 %v1977_v62 }
  0x18   : > { %v260_v38 = vld [vmem:[%s2791_s30 + $0x21] sm:$0xff]  ;;  %v261_v39 = vld [vmem:[%s2791_s30 + $0x29] sm:$0xff]  ;;  %v304_v41 = vpack.c.bf16 %v281_v37, %v280_v36  ;;  %v291_v44 = vld [vmem:[%s2791_s30 + $0x119] sm:$0xff]  ;;  %1490 = vmatpush.bf16.msra.mxu1 %v1481_v63  ;;  %2234 = vmatpush.bf16.msra.mxu0 %v2225_v1 }
  0x19   : > { %v294_v42 = vpack.c.bf16 %v261_v39, %v260_v38  ;;  %v309_v45 = vpack.c.bf16 %v291_v44, %v290_v43  ;;  %v272_v46 = vld [vmem:[%s2791_s30 + $0x81] sm:$0xff]  ;;  %v273_v47 = vld [vmem:[%s2791_s30 + $0x89] sm:$0xff]  ;;  %v282_v48 = vld [vmem:[%s2791_s30 + $0xd1] sm:$0xff] }
  0x1a   : > { %v283_v49 = vld [vmem:[%s2791_s30 + $0xd9] sm:$0xff]  ;;  %v262_v50 = vld [vmem:[%s2791_s30 + $0x31] sm:$0xff]  ;;  %v300_v52 = vpack.c.bf16 %v273_v47, %v272_v46  ;;  %v284_v4 = vld [vmem:[%s2791_s30 + $0xe1] sm:$0xff] }
  0x1b   : > { %v263_v51 = vld [vmem:[%s2791_s30 + $0x39] sm:$0xff]  ;;  %v305_v53 = vpack.c.bf16 %v283_v49, %v282_v48  ;;  %v274_v2 = vld [vmem:[%s2791_s30 + $0x91] sm:$0xff]  ;;  %v285_v5 = vld [vmem:[%s2791_s30 + $0xe9] sm:$0xff] }
  0x1c   : > { %v295_v54 = vpack.c.bf16 %v263_v51, %v262_v50  ;;  %v874_v55 = vld [vmem:[%s2791_s30 + $0x12] sm:$0xff]  ;;  %v875_v56 = vld [vmem:[%s2791_s30 + $0x1a] sm:$0xff]  ;;  %v265_v7 = vld [vmem:[%s2791_s30 + $0x49] sm:$0xff]  ;;  %v306_v9 = vpack.c.bf16 %v285_v5, %v284_v4 }
  0x1d   : > { %v910_v57 = vpack.c.bf16 %v875_v56, %v874_v55  ;;  %v275_v3 = vld [vmem:[%s2791_s30 + $0x99] sm:$0xff]  ;;  %v264_v6 = vld [vmem:[%s2791_s30 + $0x41] sm:$0xff]  ;;  %v877_v12 = vld [vmem:[%s2791_s30 + $0x2a] sm:$0xff] }
  0x1e   : > { %v301_v8 = vpack.c.bf16 %v275_v3, %v274_v2  ;;  %v296_v10 = vpack.c.bf16 %v265_v7, %v264_v6  ;;  %v876_v11 = vld [vmem:[%s2791_s30 + $0x22] sm:$0xff]  ;;  %v627_v17 = vld [vmem:[%s2791_s30 + $0xa] sm:$0xff]  ;;  %v1122_v18 = vld [vmem:[%s2791_s30 + $0x13] sm:$0xff] }
  0x1f   : > { %v911_v13 = vpack.c.bf16 %v877_v12, %v876_v11  ;;  %v201_v14 = vld [vmem:[%s2791_s30] sm:$0xff]  ;;  %v202_v15 = vld [vmem:[%s2791_s30 + $0x8] sm:$0xff]  ;;  %v878_v23 = vld [vmem:[%s2791_s30 + $0x32] sm:$0xff] }
  0x20   : > { %v626_v16 = vld [vmem:[%s2791_s30 + $0x2] sm:$0xff]  ;;  %v237_v20 = vpack.c.bf16 %v202_v15, %v201_v14  ;;  %v879_v24 = vld [vmem:[%s2791_s30 + $0x3a] sm:$0xff]  ;;  %v203_v26 = vld [vmem:[%s2791_s30 + $0x10] sm:$0xff] }
  0x21   : > { %v1123_v19 = vld [vmem:[%s2791_s30 + $0x1b] sm:$0xff]  ;;  %v662_v21 = vpack.c.bf16 %v627_v17, %v626_v16  ;;  %v912_v25 = vpack.c.bf16 %v879_v24, %v878_v23  ;;  %v206_v36 = vld [vmem:[%s2791_s30 + $0x28] sm:$0xff]  ;;  %v1126_v37 = vld [vmem:[%s2791_s30 + $0x33] sm:$0xff] }
  0x22   : > { %v1158_v22 = vpack.c.bf16 %v1123_v19, %v1122_v18  ;;  %v204_v27 = vld [vmem:[%s2791_s30 + $0x18] sm:$0xff]  ;;  %v880_v32 = vld [vmem:[%s2791_s30 + $0x42] sm:$0xff]  ;;  %v207_v44 = vld [vmem:[%s2791_s30 + $0x30] sm:$0xff] }
  0x23   : > { %v205_v35 = vld [vmem:[%s2791_s30 + $0x20] sm:$0xff]  ;;  %v1129_v47 = vld [vmem:[%s2791_s30 + $0x4b] sm:$0xff]  ;;  %v1130_v61 = vld [vmem:[%s2791_s30 + $0x53] sm:$0xff] }
  0x24   : > { %2546 = vmatmul.msk.bf16.gmra.mxu1 %vm312_vm1, %v298_v28  ;;  %v1124_v28 = vld [vmem:[%s2791_s30 + $0x23] sm:$0xff]  ;;  %v1127_v38 = vld [vmem:[%s2791_s30 + $0x3b] sm:$0xff]  ;;  %v239_v39 = vpack.c.bf16 %v206_v36, %v205_v35  ;;  %v886_v3 = vld [vmem:[%s2791_s30 + $0x72] sm:$0xff] }
  0x25   : > { %2551 = vmatmul.msk.bf16.gmra.mxu2 %vm312_vm1, %v303_v29  ;;  %v1125_v29 = vld [vmem:[%s2791_s30 + $0x2b] sm:$0xff]  ;;  %v1128_v46 = vld [vmem:[%s2791_s30 + $0x43] sm:$0xff]  ;;  %v1131_v62 = vld [vmem:[%s2791_s30 + $0x5b] sm:$0xff] }
  0x26   : > { %2541 = vmatmul.msk.bf16.gmra.mxu0 %vm312_vm1, %v293_v30  ;;  %2556 = vmatmul.msk.bf16.gmra.mxu3 %vm312_vm1, %v308_v33  ;;  %v238_v30 = vpack.c.bf16 %v204_v27, %v203_v26  ;;  %v1159_v31 = vpack.c.bf16 %v1125_v29, %v1124_v28  ;;  %v881_v33 = vld [vmem:[%s2791_s30 + $0x4a] sm:$0xff]  ;;  %v1161_v50 = vpack.c.bf16 %v1129_v47, %v1128_v46  ;;  %v884_v51 = vld [vmem:[%s2791_s30 + $0x62] sm:$0xff]  ;;  %v887_v4 = vld [vmem:[%s2791_s30 + $0x7a] sm:$0xff] }
  0x27   : > { %v913_v34 = vpack.c.bf16 %v881_v33, %v880_v32  ;;  %v209_v59 = vld [vmem:[%s2791_s30 + $0x40] sm:$0xff]  ;;  %v210_v60 = vld [vmem:[%s2791_s30 + $0x48] sm:$0xff]  ;;  %v1162_v2 = vpack.c.bf16 %v1131_v62, %v1130_v61  ;;  %v2945_v7 = vpack.c.bf16 %v887_v4, %v886_v3  ;;  %v211_v12 = vld [vmem:[%s2791_s30 + $0x50] sm:$0xff] }
  0x28   : > { %v241_v0 = vpack.c.bf16 %v210_v60, %v209_v59  ;;  %v1132_v14 = vld [vmem:[%s2791_s30 + $0x63] sm:$0xff]  ;;  %v1133_v15 = vld [vmem:[%s2791_s30 + $0x6b] sm:$0xff]  ;;  %v1135_v32 = vld [vmem:[%s2791_s30 + $0x7b] sm:$0xff] }
  0x29   : > { %v1163_v19 = vpack.c.bf16 %v1133_v15, %v1132_v14  ;;  %v213_v29 = vld [vmem:[%s2791_s30 + $0x60] sm:$0xff]  ;;  %v215_v46 = vld [vmem:[%s2791_s30 + $0x70] sm:$0xff]  ;;  %v216_v47 = vld [vmem:[%s2791_s30 + $0x78] sm:$0xff] }
  0x2a   : > { %v892_v60 = vld [vmem:[%s2791_s30 + $0xa2] sm:$0xff]  ;;  %v893_v61 = vld [vmem:[%s2791_s30 + $0xaa] sm:$0xff] }
  0x2b   : > { %v217_v14 = vld [vmem:[%s2791_s30 + $0x80] sm:$0xff]  ;;  %v218_v15 = vld [vmem:[%s2791_s30 + $0x88] sm:$0xff] }
  0x34   : > { %2547 = vmatmul.msk.bf16.gmra.mxu1 %vm312_vm1, %v299_v40  ;;  %v1160_v40 = vpack.c.bf16 %v1127_v38, %v1126_v37  ;;  %v890_v37 = vld [vmem:[%s2791_s30 + $0x92] sm:$0xff]  ;;  %v891_v38 = vld [vmem:[%s2791_s30 + $0x9a] sm:$0xff] }
  0x35   : > { %2552 = vmatmul.msk.bf16.gmra.mxu2 %vm312_vm1, %v304_v41  ;;  %v882_v41 = vld [vmem:[%s2791_s30 + $0x52] sm:$0xff] }
  0x36   : > { %2542 = vmatmul.msk.bf16.gmra.mxu0 %vm312_vm1, %v294_v42  ;;  %2557 = vmatmul.msk.bf16.gmra.mxu3 %vm312_vm1, %v309_v45  ;;  %v883_v42 = vld [vmem:[%s2791_s30 + $0x5a] sm:$0xff] }
  0x37   : > { %v914_v43 = vpack.c.bf16 %v883_v42, %v882_v41  ;;  %v208_v45 = vld [vmem:[%s2791_s30 + $0x38] sm:$0xff]  ;;  %v3003_v41 = vpack.c.bf16 %v891_v38, %v890_v37 }
  0x38   : > { %v240_v48 = vpack.c.bf16 %v208_v45, %v207_v44 }
  0x44   : > { %2548 = vmatmul.msk.bf16.gmra.mxu1 %vm312_vm1, %v300_v52  ;;  %v885_v52 = vld [vmem:[%s2791_s30 + $0x6a] sm:$0xff] }
  0x45   : > { %2553 = vmatmul.msk.bf16.gmra.mxu2 %vm312_vm1, %v305_v53 }
  0x46   : > { %2543 = vmatmul.msk.bf16.gmra.mxu0 %vm312_vm1, %v295_v54  ;;  %2596 = vmatmul.msk.bf16.vlgmr.msrb.gmra.mxu3 %vm312_vm1, %v910_v57  ;;  %v2916_v54 = vpack.c.bf16 %v885_v52, %v884_v51  ;;  %v244_v52 = vpack.c.bf16 %v216_v47, %v215_v46 }
  0x54   : > { %2549 = vmatmul.msk.bf16.gmra.mxu1 %vm312_vm1, %v301_v8 }
  0x55   : > { %2554 = vmatmul.msk.bf16.gmra.mxu2 %vm312_vm1, %v306_v9 }
  0x56   : > { %2544 = vmatmul.msk.bf16.gmra.mxu0 %vm312_vm1, %v296_v10  ;;  %2597 = vmatmul.msk.bf16.gmra.mxu3 %vm312_vm1, %v911_v13 }
  0x64   : > { %2558 = vmatmul.msk.bf16.vlgmr.msrb.gmra.mxu1 %vm312_vm1, %v237_v20  ;;  %v888_v20 = vld [vmem:[%s2791_s30 + $0x82] sm:$0xff] }
  0x65   : > { %2577 = vmatmul.msk.bf16.vlgmr.msrb.gmra.mxu2 %vm312_vm1, %v662_v21  ;;  %v889_v21 = vld [vmem:[%s2791_s30 + $0x8a] sm:$0xff] }
  0x66   : > { %2615 = vmatmul.msk.bf16.vlgmr.msrb.gmra.mxu0 %vm312_vm1, %v1158_v22  ;;  %2598 = vmatmul.msk.bf16.gmra.mxu3 %vm312_vm1, %v912_v25  ;;  %v2974_v24 = vpack.c.bf16 %v889_v21, %v888_v20 }
  0x74   : > { %2559 = vmatmul.msk.bf16.gmra.mxu1 %vm312_vm1, %v238_v30  ;;  %v214_v30 = vld [vmem:[%s2791_s30 + $0x68] sm:$0xff] }
  0x75   : > { %2578 = vmatmul.msk.bf16.gmra.mxu2 %vm312_vm1, %v910_v57 }
  0x76   : > { %2616 = vmatmul.msk.bf16.gmra.mxu0 %vm312_vm1, %v1159_v31  ;;  %2599 = vmatmul.msk.bf16.gmra.mxu3 %vm312_vm1, %v913_v34  ;;  %v1134_v31 = vld [vmem:[%s2791_s30 + $0x73] sm:$0xff] }
  0x77   : > { %v1164_v36 = vpack.c.bf16 %v1135_v32, %v1134_v31  ;;  %v895_v31 = vld [vmem:[%s2791_s30 + $0xba] sm:$0xff] }
  0x84   : > { %2560 = vmatmul.msk.bf16.gmra.mxu1 %vm312_vm1, %v239_v39 }
  0x85   : > { %2579 = vmatmul.msk.bf16.gmra.mxu2 %vm312_vm1, %v911_v13  ;;  %v212_v13 = vld [vmem:[%s2791_s30 + $0x58] sm:$0xff] }
  0x86   : > { %2617 = vmatmul.msk.bf16.gmra.mxu0 %vm312_vm1, %v1160_v40  ;;  %2600 = vmatmul.msk.bf16.gmra.mxu3 %vm312_vm1, %v914_v43  ;;  %v242_v17 = vpack.c.bf16 %v212_v13, %v211_v12 }
  0x91   : > { %v2909_v49 = vpop.f32.mrf.mxu1 }
  0x93   : > { %v2913_v53 = vpop.f32.mrf.mxu0 }
  0x94   : > { %2561 = vmatmul.msk.bf16.gmra.mxu1 %vm312_vm1, %v240_v48  ;;  %v1136_v48 = vld [vmem:[%s2791_s30 + $0x83] sm:$0xff] }
  0x95   : > { %2580 = vmatmul.msk.bf16.gmra.mxu2 %vm312_vm1, %v912_v25 }
  0x96   : > { %2618 = vmatmul.msk.bf16.gmra.mxu0 %vm312_vm1, %v1161_v50  ;;  %2601 = vmatmul.msk.bf16.gmra.mxu3 %vm312_vm1, %v2916_v54  ;;  %v1137_v50 = vld [vmem:[%s2791_s30 + $0x8b] sm:$0xff] }
  0x97   : > { %v1165_v59 = vpack.c.bf16 %v1137_v50, %v1136_v48 }
  0x98   : > { %v2920_v55 = vpop.f32.mrf.mxu2 }
  0x99   : > { %v2924_v56 = vpop.f32.mrf.mxu1  ;;  %v2928_v58 = vpop.f32.mrf.mxu3 }
  0x9b   : > { %v2926_v57 = vpop.f32.mrf.mxu0 }
  0xa0   : > { %v2934_v63 = vpop.f32.mrf.mxu2 }
  0xa1   : > { %v2936_v1 = vpop.f32.mrf.mxu1  ;;  %v2942_v6 = vpop.f32.mrf.mxu3 }
  0xa3   : > { %v2940_v5 = vpop.f32.mrf.mxu0 }
  0xa4   : > { %2562 = vmatmul.msk.bf16.gmra.mxu1 %vm312_vm1, %v241_v0 }
  0xa5   : > { %2581 = vmatmul.msk.bf16.gmra.mxu2 %vm312_vm1, %v913_v34  ;;  %v243_v34 = vpack.c.bf16 %v214_v30, %v213_v29  ;;  %v894_v30 = vld [vmem:[%s2791_s30 + $0xb2] sm:$0xff] }
  0xa6   : > { %2619 = vmatmul.msk.bf16.gmra.mxu0 %vm312_vm1, %v1162_v2  ;;  %2602 = vmatmul.msk.bf16.gmra.mxu3 %vm312_vm1, %v2945_v7  ;;  %v3029_v2 = vpack.c.bf16 %v893_v61, %v892_v60  ;;  %v220_v60 = vld [vmem:[%s2791_s30 + $0x98] sm:$0xff] }
  0xa8   : > { %v2949_v8 = vpop.f32.mrf.mxu2 }
  0xa9   : > { %v2953_v9 = vpop.f32.mrf.mxu1  ;;  %v2957_v11 = vpop.f32.mrf.mxu3 }
  0xab   : > { %v2955_v10 = vpop.f32.mrf.mxu0 }
  0xb0   : > { %v2963_v16 = vpop.f32.mrf.mxu2 }
  0xb1   : > { %v2965_v18 = vpop.f32.mrf.mxu1  ;;  %v2971_v23 = vpop.f32.mrf.mxu3 }
  0xb3   : > { %v2969_v22 = vpop.f32.mrf.mxu0 }
  0xb4   : > { %2563 = vmatmul.msk.bf16.gmra.mxu1 %vm312_vm1, %v242_v17  ;;  %v1138_v17 = vld [vmem:[%s2791_s30 + $0x93] sm:$0xff] }
  0xb5   : > { %2582 = vmatmul.msk.bf16.gmra.mxu2 %vm312_vm1, %v914_v43 }
  0xb6   : > { %2620 = vmatmul.msk.bf16.gmra.mxu0 %vm312_vm1, %v1163_v19  ;;  %2603 = vmatmul.msk.bf16.gmra.mxu3 %vm312_vm1, %v2974_v24  ;;  %v1139_v19 = vld [vmem:[%s2791_s30 + $0x9b] sm:$0xff] }
  0xb7   : > { %v1166_v29 = vpack.c.bf16 %v1139_v19, %v1138_v17 }
  0xb8   : > { %v2978_v25 = vpop.f32.mrf.mxu2 }
  0xb9   : > { %v2982_v26 = vpop.f32.mrf.mxu1  ;;  %v2986_v28 = vpop.f32.mrf.mxu3 }
  0xbb   : > { %v2984_v27 = vpop.f32.mrf.mxu0 }
  0xc0   : > { %v2992_v33 = vpop.f32.mrf.mxu2 }
  0xc1   : > { %v2994_v35 = vpop.f32.mrf.mxu1  ;;  %v3000_v40 = vpop.f32.mrf.mxu3 }
  0xc3   : > { %v2998_v39 = vpop.f32.mrf.mxu0 }
  0xc4   : > { %2564 = vmatmul.msk.bf16.gmra.mxu1 %vm312_vm1, %v243_v34 }
  0xc5   : > { %2583 = vmatmul.msk.bf16.gmra.mxu2 %vm312_vm1, %v2916_v54 }
  0xc6   : > { %2621 = vmatmul.msk.bf16.gmra.mxu0 %vm312_vm1, %v1164_v36  ;;  %2604 = vmatmul.msk.bf16.gmra.mxu3 %vm312_vm1, %v3003_v41  ;;  %v3051_v36 = vpack.c.bf16 %v895_v31, %v894_v30  ;;  %v897_v30 = vld [vmem:[%s2791_s30 + $0xca] sm:$0xff] }
  0xc8   : > { %v3008_v42 = vpop.f32.mrf.mxu2 }
  0xc9   : > { %v3012_v43 = vpop.f32.mrf.mxu1  ;;  %v996_v45 = vpop.f32.mrf.mxu3 }
  0xcb   : > { %v3014_v44 = vpop.f32.mrf.mxu0 }
  0xd0   : > { %v3020_v51 = vpop.f32.mrf.mxu2 }
  0xd1   : > { %v3022_v54 = vpop.f32.mrf.mxu1  ;;  %v998_v0 = vpop.f32.mrf.mxu3 }
  0xd3   : > { %v3026_v62 = vpop.f32.mrf.mxu0 }
  0xd4   : > { %2565 = vmatmul.msk.bf16.gmra.mxu1 %vm312_vm1, %v244_v52 }
  0xd5   : > { %2584 = vmatmul.msk.bf16.gmra.mxu2 %vm312_vm1, %v2945_v7  ;;  %v245_v7 = vpack.c.bf16 %v218_v15, %v217_v14  ;;  %v1141_v14 = vld [vmem:[%s2791_s30 + $0xab] sm:$0xff] }
  0xd6   : > { %2622 = vmatmul.msk.bf16.gmra.mxu0 %vm312_vm1, %v1165_v59  ;;  %2605 = vmatmul.msk.bf16.gmra.mxu3 %vm312_vm1, %v3029_v2  ;;  %v219_v59 = vld [vmem:[%s2791_s30 + $0x90] sm:$0xff] }
  0xd7   : > { %v246_v17 = vpack.c.bf16 %v220_v60, %v219_v59 }
  0xd8   : > { %v3034_v3 = vpop.f32.mrf.mxu2 }
  0xd9   : > { %v3038_v4 = vpop.f32.mrf.mxu1  ;;  %v1001_v13 = vpop.f32.mrf.mxu3 }
  0xdb   : > { %v3040_v12 = vpop.f32.mrf.mxu0 }
  0xe0   : > { %v3046_v20 = vpop.f32.mrf.mxu2 }
  0xe1   : > { %v536_v21 = vpop.f32.mrf.mxu1  ;;  %v1003_v34 = vpop.f32.mrf.mxu3 }
  0xe2   : > { %v537_v37 = vadd.f32 %v536_v21, %v2913_v53 }
  0xe3   : > { %v1244_v32 = vpop.f32.mrf.mxu0 }
  0xe4   : > { %2566 = vmatmul.msk.bf16.gmra.mxu1 %vm312_vm1, %v245_v7 }
  0xe5   : > { %2585 = vmatmul.msk.bf16.gmra.mxu2 %vm312_vm1, %v2974_v24  ;;  %v1140_v24 = vld [vmem:[%s2791_s30 + $0xa3] sm:$0xff] }
  0xe6   : > { %2623 = vmatmul.msk.bf16.gmra.mxu0 %vm312_vm1, %v1166_v29  ;;  %2606 = vmatmul.msk.bf16.gmra.mxu3 %vm312_vm1, %v3051_v36  ;;  %v1167_v21 = vpack.c.bf16 %v1141_v14, %v1140_v24  ;;  %v896_v29 = vld [vmem:[%s2791_s30 + $0xc2] sm:$0xff] }
  0xe7   : > { %v221_v24 = vld [vmem:[%s2791_s30 + $0xa0] sm:$0xff]  ;;  %v222_v14 = vld [vmem:[%s2791_s30 + $0xa8] sm:$0xff] }
  0xe8   : > { %v748_v38 = vpop.f32.mrf.mxu2 }
  0xe9   : > { %v838_v46 = vadd.f32 %v748_v38, %v537_v37  ;;  %v538_v47 = vpop.f32.mrf.mxu1  ;;  %v1006_v52 = vpop.f32.mrf.mxu3 }
  0xea   : > { %v539_v15 = vadd.f32 %v538_v47, %v2926_v57 }
  0xeb   : > { %v1246_v48 = vpop.f32.mrf.mxu0  ;;  %v1086_v50 = vadd.f32 %v996_v45, %v838_v46 }
  0xed   : > { %v3061_v61 = vadd.f32 %v1244_v32, %v1086_v50  ;;  %v3069_v32 = vpack.c.bf16 %v897_v30, %v896_v29  ;;  %v898_v29 = vld [vmem:[%s2791_s30 + $0xd2] sm:$0xff]  ;;  %v899_v30 = vld [vmem:[%s2791_s30 + $0xda] sm:$0xff] }
  0xf0   : > { %v750_v53 = vpop.f32.mrf.mxu2 }
  0xf1   : > { %v839_v19 = vadd.f32 %v750_v53, %v539_v15  ;;  %v541_v7 = vpop.f32.mrf.mxu1  ;;  %v1008_v45 = vpop.f32.mrf.mxu3  ;;  %v1142_v15 = vld [vmem:[%s2791_s30 + $0xb3] sm:$0xff] }
  0xf2   : > { %v542_v38 = vadd.f32 %v541_v7, %v2940_v5 }
  0xf3   : > { %v1249_v31 = vpop.f32.mrf.mxu0  ;;  %v1087_v37 = vadd.f32 %v998_v0, %v839_v19 }
  0xf4   : > { %2567 = vmatmul.msk.bf16.gmra.mxu1 %vm312_vm1, %v246_v17  ;;  %v247_v17 = vpack.c.bf16 %v222_v14, %v221_v24 }
  0xf5   : > { %2586 = vmatmul.msk.bf16.gmra.mxu2 %vm312_vm1, %v3003_v41  ;;  %v3074_v57 = vadd.f32 %v1246_v48, %v1087_v37  ;;  %v1143_v48 = vld [vmem:[%s2791_s30 + $0xbb] sm:$0xff] }
  0xf6   : > { %2624 = vmatmul.msk.bf16.gmra.mxu0 %vm312_vm1, %v1167_v21  ;;  %2607 = vmatmul.msk.bf16.gmra.mxu3 %vm312_vm1, %v3069_v32  ;;  %v1168_v21 = vpack.c.bf16 %v1143_v48, %v1142_v15  ;;  %v223_v15 = vld [vmem:[%s2791_s30 + $0xb0] sm:$0xff]  ;;  %v224_v48 = vld [vmem:[%s2791_s30 + $0xb8] sm:$0xff] }
  0xf8   : > { %v753_v46 = vpop.f32.mrf.mxu2 }
  0xf9   : > { %v840_v0 = vadd.f32 %v753_v46, %v542_v38  ;;  %v543_v47 = vpop.f32.mrf.mxu1  ;;  %v1011_v60 = vpop.f32.mrf.mxu3 }
  0xfa   : > { %v544_v53 = vadd.f32 %v543_v47, %v2955_v10 }
  0xfb   : > { %v1251_v50 = vpop.f32.mrf.mxu0  ;;  %v1088_v59 = vadd.f32 %v1001_v13, %v840_v0 }
  0xfd   : > { %v3081_v41 = vadd.f32 %v1249_v31, %v1088_v59  ;;  %v3089_v31 = vpack.c.bf16 %v899_v30, %v898_v29  ;;  %v900_v29 = vld [vmem:[%s2791_s30 + $0xe2] sm:$0xff]  ;;  %v901_v30 = vld [vmem:[%s2791_s30 + $0xea] sm:$0xff] }
 0x100   : > { %v755_v5 = vpop.f32.mrf.mxu2 }
 0x101   : > { %v841_v19 = vadd.f32 %v755_v5, %v544_v53  ;;  %v546_v7 = vpop.f32.mrf.mxu1  ;;  %v1013_v13 = vpop.f32.mrf.mxu3  ;;  %v1144_v53 = vld [vmem:[%s2791_s30 + $0xc3] sm:$0xff] }
 0x102   : > { %v547_v46 = vadd.f32 %v546_v7, %v2969_v22 }
 0x103   : > { %v1254_v37 = vpop.f32.mrf.mxu0  ;;  %v1089_v38 = vadd.f32 %v1003_v34, %v841_v19 }
 0x104   : > { %2568 = vmatmul.msk.bf16.gmra.mxu1 %vm312_vm1, %v247_v17  ;;  %v248_v17 = vpack.c.bf16 %v224_v48, %v223_v15 }
 0x105   : > { %2587 = vmatmul.msk.bf16.gmra.mxu2 %vm312_vm1, %v3029_v2  ;;  %v3094_v10 = vadd.f32 %v1251_v50, %v1089_v38  ;;  %v1145_v50 = vld [vmem:[%s2791_s30 + $0xcb] sm:$0xff] }
 0x106   : > { %2625 = vmatmul.msk.bf16.gmra.mxu0 %vm312_vm1, %v1168_v21  ;;  %2608 = vmatmul.msk.bf16.gmra.mxu3 %vm312_vm1, %v3089_v31  ;;  %v1169_v21 = vpack.c.bf16 %v1145_v50, %v1144_v53  ;;  %v225_v53 = vld [vmem:[%s2791_s30 + $0xc0] sm:$0xff]  ;;  %v226_v50 = vld [vmem:[%s2791_s30 + $0xc8] sm:$0xff] }
 0x108   : > { %v758_v0 = vpop.f32.mrf.mxu2 }
 0x109   : > { %v842_v34 = vadd.f32 %v758_v0, %v547_v46  ;;  %v548_v47 = vpop.f32.mrf.mxu1  ;;  %v1016_v14 = vpop.f32.mrf.mxu3 }
 0x10a   : > { %v549_v5 = vadd.f32 %v548_v47, %v2984_v27 }
 0x10b   : > { %v1256_v59 = vpop.f32.mrf.mxu0  ;;  %v1090_v24 = vadd.f32 %v1006_v52, %v842_v34 }
 0x10d   : > { %v3101_v2 = vadd.f32 %v1254_v37, %v1090_v24  ;;  %v3109_v37 = vpack.c.bf16 %v901_v30, %v900_v29  ;;  %v902_v29 = vld [vmem:[%s2791_s30 + $0xf2] sm:$0xff]  ;;  %v903_v30 = vld [vmem:[%s2791_s30 + $0xfa] sm:$0xff] }
 0x110   : > { %v760_v22 = vpop.f32.mrf.mxu2 }
 0x111   : > { %v843_v19 = vadd.f32 %v760_v22, %v549_v5  ;;  %v551_v7 = vpop.f32.mrf.mxu1  ;;  %v1018_v52 = vpop.f32.mrf.mxu3  ;;  %v1146_v5 = vld [vmem:[%s2791_s30 + $0xd3] sm:$0xff] }
 0x112   : > { %v552_v0 = vadd.f32 %v551_v7, %v2998_v39 }
 0x113   : > { %v1259_v38 = vpop.f32.mrf.mxu0  ;;  %v1091_v46 = vadd.f32 %v1008_v45, %v843_v19 }
 0x114   : > { %2569 = vmatmul.msk.bf16.gmra.mxu1 %vm312_vm1, %v248_v17  ;;  %v249_v17 = vpack.c.bf16 %v226_v50, %v225_v53 }
 0x115   : > { %2588 = vmatmul.msk.bf16.gmra.mxu2 %vm312_vm1, %v3051_v36  ;;  %v3114_v27 = vadd.f32 %v1256_v59, %v1091_v46  ;;  %v1147_v59 = vld [vmem:[%s2791_s30 + $0xdb] sm:$0xff] }
 0x116   : > { %2626 = vmatmul.msk.bf16.gmra.mxu0 %vm312_vm1, %v1169_v21  ;;  %2609 = vmatmul.msk.bf16.gmra.mxu3 %vm312_vm1, %v3109_v37  ;;  %v1170_v21 = vpack.c.bf16 %v1147_v59, %v1146_v5  ;;  %v227_v5 = vld [vmem:[%s2791_s30 + $0xd0] sm:$0xff]  ;;  %v228_v59 = vld [vmem:[%s2791_s30 + $0xd8] sm:$0xff] }
 0x118   : > { %v763_v34 = vpop.f32.mrf.mxu2 }
 0x119   : > { %v844_v45 = vadd.f32 %v763_v34, %v552_v0  ;;  %v553_v47 = vpop.f32.mrf.mxu1  ;;  %v1021_v48 = vpop.f32.mrf.mxu3 }
 0x11a   : > { %v554_v22 = vadd.f32 %v553_v47, %v3014_v44 }
 0x11b   : > { %v1261_v24 = vpop.f32.mrf.mxu0  ;;  %v1092_v15 = vadd.f32 %v1011_v60, %v844_v45 }
 0x11d   : > { %v3121_v36 = vadd.f32 %v1259_v38, %v1092_v15  ;;  %v3129_v38 = vpack.c.bf16 %v903_v30, %v902_v29  ;;  %v904_v29 = vld [vmem:[%s2791_s30 + $0x102] sm:$0xff]  ;;  %v905_v30 = vld [vmem:[%s2791_s30 + $0x10a] sm:$0xff] }
 0x120   : > { %v765_v39 = vpop.f32.mrf.mxu2 }
 0x121   : > { %v845_v19 = vadd.f32 %v765_v39, %v554_v22  ;;  %v556_v7 = vpop.f32.mrf.mxu1  ;;  %v1023_v60 = vpop.f32.mrf.mxu3  ;;  %v1148_v22 = vld [vmem:[%s2791_s30 + $0xe3] sm:$0xff] }
 0x122   : > { %v557_v34 = vadd.f32 %v556_v7, %v3026_v62 }
 0x123   : > { %v1264_v46 = vpop.f32.mrf.mxu0  ;;  %v1093_v0 = vadd.f32 %v1013_v13, %v845_v19 }
 0x124   : > { %2570 = vmatmul.msk.bf16.gmra.mxu1 %vm312_vm1, %v249_v17  ;;  %v250_v17 = vpack.c.bf16 %v228_v59, %v227_v5 }
 0x125   : > { %2589 = vmatmul.msk.bf16.gmra.mxu2 %vm312_vm1, %v3069_v32  ;;  %v3134_v44 = vadd.f32 %v1261_v24, %v1093_v0  ;;  %v1149_v24 = vld [vmem:[%s2791_s30 + $0xeb] sm:$0xff] }
 0x126   : > { %2627 = vmatmul.msk.bf16.gmra.mxu0 %vm312_vm1, %v1170_v21  ;;  %2610 = vmatmul.msk.bf16.gmra.mxu3 %vm312_vm1, %v3129_v38  ;;  %v1171_v21 = vpack.c.bf16 %v1149_v24, %v1148_v22  ;;  %v229_v22 = vld [vmem:[%s2791_s30 + $0xe0] sm:$0xff]  ;;  %v230_v24 = vld [vmem:[%s2791_s30 + $0xe8] sm:$0xff] }
 0x128   : > { %v768_v45 = vpop.f32.mrf.mxu2 }
 0x129   : > { %v846_v13 = vadd.f32 %v768_v45, %v557_v34  ;;  %v558_v47 = vpop.f32.mrf.mxu1  ;;  %v1026_v50 = vpop.f32.mrf.mxu3 }
 0x12a   : > { %v559_v39 = vadd.f32 %v558_v47, %v3040_v12 }
 0x12b   : > { %v1266_v15 = vpop.f32.mrf.mxu0  ;;  %v1094_v53 = vadd.f32 %v1016_v14, %v846_v13 }
 0x12d   : > { %v3141_v32 = vadd.f32 %v1264_v46, %v1094_v53  ;;  %v3149_v46 = vpack.c.bf16 %v905_v30, %v904_v29  ;;  %v906_v29 = vld [vmem:[%s2791_s30 + $0x112] sm:$0xff]  ;;  %v907_v30 = vld [vmem:[%s2791_s30 + $0x11a] sm:$0xff] }
 0x130   : > { %v770_v62 = vpop.f32.mrf.mxu2 }
 0x131   : > { %v847_v19 = vadd.f32 %v770_v62, %v559_v39  ;;  %v561_v7 = vpop.f32.mrf.mxu1  ;;  %v1028_v14 = vpop.f32.mrf.mxu3  ;;  %v1150_v39 = vld [vmem:[%s2791_s30 + $0xf3] sm:$0xff] }
 0x132   : > { %v562_v45 = vadd.f32 %v561_v7, %v2909_v49 }
 0x133   : > { %v1269_v0 = vpop.f32.mrf.mxu0  ;;  %v1095_v34 = vadd.f32 %v1018_v52, %v847_v19 }
 0x134   : > { %2571 = vmatmul.msk.bf16.gmra.mxu1 %vm312_vm1, %v250_v17  ;;  %v251_v17 = vpack.c.bf16 %v230_v24, %v229_v22 }
 0x135   : > { %2590 = vmatmul.msk.bf16.gmra.mxu2 %vm312_vm1, %v3089_v31  ;;  %v3154_v12 = vadd.f32 %v1266_v15, %v1095_v34  ;;  %v1151_v15 = vld [vmem:[%s2791_s30 + $0xfb] sm:$0xff] }
 0x136   : > { %2628 = vmatmul.msk.bf16.gmra.mxu0 %vm312_vm1, %v1171_v21  ;;  %2611 = vmatmul.msk.bf16.gmra.mxu3 %vm312_vm1, %v3149_v46  ;;  %v1172_v21 = vpack.c.bf16 %v1151_v15, %v1150_v39  ;;  %v231_v39 = vld [vmem:[%s2791_s30 + $0xf0] sm:$0xff]  ;;  %v232_v15 = vld [vmem:[%s2791_s30 + $0xf8] sm:$0xff] }
 0x138   : > { %v773_v13 = vpop.f32.mrf.mxu2 }
 0x139   : > { %v848_v52 = vadd.f32 %v773_v13, %v562_v45  ;;  %v563_v47 = vpop.f32.mrf.mxu1  ;;  %v1031_v59 = vpop.f32.mrf.mxu3 }
 0x13a   : > { %v564_v62 = vadd.f32 %v563_v47, %v2924_v56 }
 0x13b   : > { %v1271_v53 = vpop.f32.mrf.mxu0  ;;  %v1096_v5 = vadd.f32 %v1021_v48, %v848_v52 }
 0x13d   : > { %v3161_v31 = vadd.f32 %v1269_v0, %v1096_v5  ;;  %v3169_v0 = vpack.c.bf16 %v907_v30, %v906_v29  ;;  %v908_v29 = vld [vmem:[%s2791_s30 + $0x122] sm:$0xff]  ;;  %v909_v30 = vld [vmem:[%s2791_s30 + $0x12a] sm:$0xff] }
 0x140   : > { %v775_v49 = vpop.f32.mrf.mxu2 }
 0x141   : > { %v849_v19 = vadd.f32 %v775_v49, %v564_v62  ;;  %v566_v7 = vpop.f32.mrf.mxu1  ;;  %v1033_v48 = vpop.f32.mrf.mxu3  ;;  %v1152_v62 = vld [vmem:[%s2791_s30 + $0x103] sm:$0xff] }
 0x142   : > { %v567_v13 = vadd.f32 %v566_v7, %v2936_v1 }
 0x143   : > { %v1274_v34 = vpop.f32.mrf.mxu0  ;;  %v1097_v45 = vadd.f32 %v1023_v60, %v849_v19 }
 0x144   : > { %2572 = vmatmul.msk.bf16.gmra.mxu1 %vm312_vm1, %v251_v17  ;;  %v252_v17 = vpack.c.bf16 %v232_v15, %v231_v39 }
 0x145   : > { %2591 = vmatmul.msk.bf16.gmra.mxu2 %vm312_vm1, %v3109_v37  ;;  %v3174_v56 = vadd.f32 %v1271_v53, %v1097_v45  ;;  %v1153_v53 = vld [vmem:[%s2791_s30 + $0x10b] sm:$0xff] }
 0x146   : > { %2629 = vmatmul.msk.bf16.gmra.mxu0 %vm312_vm1, %v1172_v21  ;;  %2612 = vmatmul.msk.bf16.gmra.mxu3 %vm312_vm1, %v3169_v0  ;;  %v1173_v21 = vpack.c.bf16 %v1153_v53, %v1152_v62  ;;  %v233_v62 = vld [vmem:[%s2791_s30 + $0x100] sm:$0xff]  ;;  %v234_v53 = vld [vmem:[%s2791_s30 + $0x108] sm:$0xff] }
 0x148   : > { %v778_v52 = vpop.f32.mrf.mxu2 }
 0x149   : > { %v850_v60 = vadd.f32 %v778_v52, %v567_v13  ;;  %v568_v47 = vpop.f32.mrf.mxu1  ;;  %v1036_v24 = vpop.f32.mrf.mxu3 }
 0x14a   : > { %v569_v49 = vadd.f32 %v568_v47, %v2953_v9 }
 0x14b   : > { %v1276_v5 = vpop.f32.mrf.mxu0  ;;  %v1098_v22 = vadd.f32 %v1026_v50, %v850_v60 }
 0x14d   : > { %v3181_v37 = vadd.f32 %v1274_v34, %v1098_v22  ;;  %v927_v34 = vpack.c.bf16 %v909_v30, %v908_v29  ;;  %v1866_v29 = vld [vmem:[%s2791_s30 + $0x25] sm:$0xff]  ;;  %v1867_v30 = vld [vmem:[%s2791_s30 + $0x2d] sm:$0xff] }
 0x150   : > { %v780_v1 = vpop.f32.mrf.mxu2 }
 0x151   : > { %v851_v19 = vadd.f32 %v780_v1, %v569_v49  ;;  %v571_v7 = vpop.f32.mrf.mxu1  ;;  %v1038_v50 = vpop.f32.mrf.mxu3  ;;  %v1155_v1 = vld [vmem:[%s2791_s30 + $0x11b] sm:$0xff] }
 0x152   : > { %v572_v52 = vadd.f32 %v571_v7, %v2965_v18  ;;  %v253_v18 = vpack.c.bf16 %v234_v53, %v233_v62  ;;  %v235_v53 = vld [vmem:[%s2791_s30 + $0x110] sm:$0xff] }
 0x153   : > { %v1279_v45 = vpop.f32.mrf.mxu0  ;;  %v1099_v13 = vadd.f32 %v1028_v14, %v851_v19 }
 0x154   : > { %2573 = vmatmul.msk.bf16.gmra.mxu1 %vm312_vm1, %v252_v17 }
 0x155   : > { %2592 = vmatmul.msk.bf16.gmra.mxu2 %vm312_vm1, %v3129_v38  ;;  %v3192_v9 = vadd.f32 %v1276_v5, %v1099_v13  ;;  %v1154_v38 = vld [vmem:[%s2791_s30 + $0x113] sm:$0xff] }
 0x156   : > { %2630 = vmatmul.msk.bf16.gmra.mxu0 %vm312_vm1, %v1173_v21  ;;  %2613 = vmatmul.msk.bf16.gmra.mxu3 %vm312_vm1, %v927_v34  ;;  %v1174_v21 = vpack.c.bf16 %v1155_v1, %v1154_v38  ;;  %v236_v38 = vld [vmem:[%s2791_s30 + $0x118] sm:$0xff] }
 0x158   : > { %v783_v60 = vpop.f32.mrf.mxu2 }
 0x159   : > { %v852_v14 = vadd.f32 %v783_v60, %v572_v52  ;;  %v573_v47 = vpop.f32.mrf.mxu1  ;;  %v1041_v15 = vpop.f32.mrf.mxu3 }
 0x15a   : > { %v574_v5 = vadd.f32 %v573_v47, %v2982_v26 }
 0x15b   : > { %v1281_v22 = vpop.f32.mrf.mxu0  ;;  %v1100_v39 = vadd.f32 %v1031_v59, %v852_v14 }
 0x15d   : > { %v3198_v49 = vadd.f32 %v1279_v45, %v1100_v39  ;;  %v1902_v45 = vpack.c.bf16 %v1867_v30, %v1866_v29  ;;  %v1869_v29 = vld [vmem:[%s2791_s30 + $0x3d] sm:$0xff] }
 0x160   : > { %v785_v17 = vpop.f32.mrf.mxu2 }
 0x161   : > { %v853_v19 = vadd.f32 %v785_v17, %v574_v5  ;;  %v576_v7 = vpop.f32.mrf.mxu1  ;;  %v1043_v59 = vpop.f32.mrf.mxu3  ;;  %v1157_v5 = vld [vmem:[%s2791_s30 + $0x12b] sm:$0xff] }
 0x162   : > { %v577_v52 = vadd.f32 %v576_v7, %v2994_v35  ;;  %v254_v35 = vpack.c.bf16 %v236_v38, %v235_v53  ;;  %v1370_v53 = vld [vmem:[%s2791_s30 + $0x14] sm:$0xff]  ;;  %v1618_v38 = vld [vmem:[%s2791_s30 + $0x24] sm:$0xff] }
 0x163   : > { %v1284_v13 = vpop.f32.mrf.mxu0  ;;  %v1101_v34 = vadd.f32 %v1033_v48, %v853_v19 }
 0x164   : > { %2574 = vmatmul.msk.bf16.gmra.mxu1 %vm312_vm1, %v253_v18 }
 0x165   : > { %2593 = vmatmul.msk.bf16.gmra.mxu2 %vm312_vm1, %v3149_v46  ;;  %v3209_v26 = vadd.f32 %v1281_v22, %v1101_v34  ;;  %v1156_v46 = vld [vmem:[%s2791_s30 + $0x123] sm:$0xff] }
 0x166   : > { %2631 = vmatmul.msk.bf16.gmra.mxu0 %vm312_vm1, %v1174_v21  ;;  %2672 = vmatmul.msk.bf16.vlgmr.msra.gmra.mxu3 %vm312_vm1, %v1902_v45  ;;  %v1175_v7 = vpack.c.bf16 %v1157_v5, %v1156_v46  ;;  %v1868_v21 = vld [vmem:[%s2791_s30 + $0x35] sm:$0xff]  ;;  %v1619_v5 = vld [vmem:[%s2791_s30 + $0x2c] sm:$0xff] }
 0x168   : > { %v788_v60 = vpop.f32.mrf.mxu2 }
 0x169   : > { %v854_v48 = vadd.f32 %v788_v60, %v577_v52  ;;  %v578_v14 = vpop.f32.mrf.mxu1  ;;  %v1046_v62 = vpop.f32.mrf.mxu3 }
 0x16a   : > { %v579_v22 = vadd.f32 %v578_v14, %v3012_v43 }
 0x16b   : > { %v1286_v47 = vpop.f32.mrf.mxu0  ;;  %v1102_v39 = vadd.f32 %v1036_v24, %v854_v48 }
 0x16d   : > { %v3215_v1 = vadd.f32 %v1284_v13, %v1102_v39  ;;  %v1903_v13 = vpack.c.bf16 %v1869_v29, %v1868_v21  ;;  %v1871_v29 = vld [vmem:[%s2791_s30 + $0x4d] sm:$0xff] }
 0x170   : > { %v790_v17 = vpop.f32.mrf.mxu2 }
 0x171   : > { %v855_v18 = vadd.f32 %v790_v17, %v579_v22  ;;  %v581_v19 = vpop.f32.mrf.mxu1  ;;  %v1048_v24 = vpop.f32.mrf.mxu3  ;;  %v2115_v22 = vld [vmem:[%s2791_s30 + $0x2e] sm:$0xff] }
 0x172   : > { %v582_v45 = vadd.f32 %v581_v19, %v3022_v54 }
 0x173   : > { %v1289_v30 = vpop.f32.mrf.mxu0  ;;  %v1103_v34 = vadd.f32 %v1038_v50, %v855_v18 }
 0x174   : > { %2575 = vmatmul.msk.bf16.gmra.mxu1 %vm312_vm1, %v254_v35 }
 0x175   : > { %2594 = vmatmul.msk.bf16.gmra.mxu2 %vm312_vm1, %v3169_v0  ;;  %v3226_v43 = vadd.f32 %v1286_v47, %v1103_v34  ;;  %v1371_v0 = vld [vmem:[%s2791_s30 + $0x1c] sm:$0xff]  ;;  %v2114_v47 = vld [vmem:[%s2791_s30 + $0x26] sm:$0xff] }
 0x176   : > { %2632 = vmatmul.msk.bf16.gmra.mxu0 %vm312_vm1, %v1175_v7  ;;  %2673 = vmatmul.msk.bf16.gmra.mxu3 %vm312_vm1, %v1903_v13  ;;  %v1406_v35 = vpack.c.bf16 %v1371_v0, %v1370_v53  ;;  %v1654_v7 = vpack.c.bf16 %v1619_v5, %v1618_v38  ;;  %v2150_v21 = vpack.c.bf16 %v2115_v22, %v2114_v47  ;;  %v1620_v38 = vld [vmem:[%s2791_s30 + $0x34] sm:$0xff]  ;;  %v1621_v47 = vld [vmem:[%s2791_s30 + $0x3c] sm:$0xff] }
 0x177   : > { %v2116_v22 = vld [vmem:[%s2791_s30 + $0x36] sm:$0xff] }
 0x178   : > { %v793_v52 = vpop.f32.mrf.mxu2 }
 0x179   : > { %v856_v50 = vadd.f32 %v793_v52, %v582_v45  ;;  %v583_v60 = vpop.f32.mrf.mxu1  ;;  %v1051_v39 = vpop.f32.mrf.mxu3 }
 0x17a   : > { %v584_v54 = vadd.f32 %v583_v60, %v3038_v4 }
 0x17b   : > { %v1291_v48 = vpop.f32.mrf.mxu0  ;;  %v1104_v14 = vadd.f32 %v1041_v15, %v856_v50  ;;  %v1870_v15 = vld [vmem:[%s2791_s30 + $0x45] sm:$0xff] }
 0x17d   : > { %v3233_v46 = vadd.f32 %v1289_v30, %v1104_v14  ;;  %v1904_v30 = vpack.c.bf16 %v1871_v29, %v1870_v15  ;;  %v1873_v15 = vld [vmem:[%s2791_s30 + $0x5d] sm:$0xff] }
 0x180   : > { %v795_v17 = vpop.f32.mrf.mxu2 }
 0x181   : > { %v857_v18 = vadd.f32 %v795_v17, %v584_v54  ;;  %v586_v19 = vpop.f32.mrf.mxu1  ;;  %v1053_v45 = vpop.f32.mrf.mxu3  ;;  %v2117_v54 = vld [vmem:[%s2791_s30 + $0x3e] sm:$0xff] }
 0x182   : > { %v587_v52 = vadd.f32 %v586_v19, %v2920_v55  ;;  %v2151_v19 = vpack.c.bf16 %v2117_v54, %v2116_v22  ;;  %v2118_v22 = vld [vmem:[%s2791_s30 + $0x46] sm:$0xff]  ;;  %v2119_v54 = vld [vmem:[%s2791_s30 + $0x4e] sm:$0xff] }
 0x183   : > { %v1294_v34 = vpop.f32.mrf.mxu0  ;;  %v1105_v13 = vadd.f32 %v1043_v59, %v857_v18  ;;  %v1655_v18 = vpack.c.bf16 %v1621_v47, %v1620_v38  ;;  %v1623_v47 = vld [vmem:[%s2791_s30 + $0x4c] sm:$0xff] }
 0x184   : > { %2634 = vmatmul.msk.bf16.vlgmr.msra.gmra.mxu1 %vm312_vm1, %v1406_v35 }
 0x185   : > { %2653 = vmatmul.msk.bf16.vlgmr.msra.gmra.mxu2 %vm312_vm1, %v1654_v7  ;;  %v3244_v4 = vadd.f32 %v1291_v48, %v1105_v13 }
 0x186   : > { %2691 = vmatmul.msk.bf16.vlgmr.msra.gmra.mxu0 %vm312_vm1, %v2150_v21  ;;  %2674 = vmatmul.msk.bf16.gmra.mxu3 %vm312_vm1, %v1904_v30  ;;  %v1872_v21 = vld [vmem:[%s2791_s30 + $0x55] sm:$0xff] }
 0x188   : > { %v798_v50 = vpop.f32.mrf.mxu2 }
 0x189   : > { %v858_v60 = vadd.f32 %v798_v50, %v587_v52  ;;  %v588_v59 = vpop.f32.mrf.mxu1  ;;  %v1056_v0 = vpop.f32.mrf.mxu3 }
 0x18a   : > { %v589_v48 = vadd.f32 %v588_v59, %v2934_v63 }
 0x18b   : > { %v1296_v14 = vpop.f32.mrf.mxu0  ;;  %v1106_v53 = vadd.f32 %v1046_v62, %v858_v60 }
 0x18d   : > { %v3249_v5 = vadd.f32 %v1294_v34, %v1106_v53  ;;  %v1905_v34 = vpack.c.bf16 %v1873_v15, %v1872_v21  ;;  %v1622_v53 = vld [vmem:[%s2791_s30 + $0x44] sm:$0xff]  ;;  %v1875_v21 = vld [vmem:[%s2791_s30 + $0x6d] sm:$0xff] }
 0x190   : > { %v800_v17 = vpop.f32.mrf.mxu2 }
 0x191   : > { %v859_v55 = vadd.f32 %v800_v17, %v589_v48  ;;  %v591_v35 = vpop.f32.mrf.mxu1  ;;  %v1058_v62 = vpop.f32.mrf.mxu3 }
 0x192   : > { %v592_v30 = vadd.f32 %v591_v35, %v2949_v8  ;;  %v2152_v35 = vpack.c.bf16 %v2119_v54, %v2118_v22  ;;  %v2120_v22 = vld [vmem:[%s2791_s30 + $0x56] sm:$0xff]  ;;  %v2121_v54 = vld [vmem:[%s2791_s30 + $0x5e] sm:$0xff] }
 0x193   : > { %v1299_v29 = vpop.f32.mrf.mxu0  ;;  %v1107_v13 = vadd.f32 %v1048_v24, %v859_v55  ;;  %v1656_v55 = vpack.c.bf16 %v1623_v47, %v1622_v53  ;;  %v1625_v47 = vld [vmem:[%s2791_s30 + $0x5c] sm:$0xff] }
 0x194   : > { %2635 = vmatmul.msk.bf16.gmra.mxu1 %vm312_vm1, %v1654_v7 }
 0x195   : > { %2654 = vmatmul.msk.bf16.gmra.mxu2 %vm312_vm1, %v1655_v18  ;;  %v3260_v63 = vadd.f32 %v1296_v14, %v1107_v13 }
 0x196   : > { %2692 = vmatmul.msk.bf16.gmra.mxu0 %vm312_vm1, %v2151_v19  ;;  %2675 = vmatmul.msk.bf16.gmra.mxu3 %vm312_vm1, %v1905_v34  ;;  %v1874_v19 = vld [vmem:[%s2791_s30 + $0x65] sm:$0xff] }
 0x198   : > { %v803_v52 = vpop.f32.mrf.mxu2 }
 0x199   : > { %v860_v50 = vadd.f32 %v803_v52, %v592_v30  ;;  %v593_v24 = vpop.f32.mrf.mxu1  ;;  %v1061_v59 = vpop.f32.mrf.mxu3 }
 0x19a   : > { %v594_v14 = vadd.f32 %v593_v24, %v2963_v16 }
 0x19b   : > { %v1301_v60 = vpop.f32.mrf.mxu0  ;;  %v1108_v7 = vadd.f32 %v1051_v39, %v860_v50 }
 0x19d   : > { %v3265_v38 = vadd.f32 %v1299_v29, %v1108_v7  ;;  %v1906_v29 = vpack.c.bf16 %v1875_v21, %v1874_v19  ;;  %v1624_v7 = vld [vmem:[%s2791_s30 + $0x54] sm:$0xff]  ;;  %v1877_v19 = vld [vmem:[%s2791_s30 + $0x7d] sm:$0xff] }
 0x1a0   : > { %v805_v48 = vpop.f32.mrf.mxu2 }
 0x1a1   : > { %v861_v8 = vadd.f32 %v805_v48, %v594_v14  ;;  %v596_v17 = vpop.f32.mrf.mxu1  ;;  %v1063_v39 = vpop.f32.mrf.mxu3 }
 0x1a2   : > { %v597_v34 = vadd.f32 %v596_v17, %v2978_v25  ;;  %v2153_v17 = vpack.c.bf16 %v2121_v54, %v2120_v22  ;;  %v2122_v22 = vld [vmem:[%s2791_s30 + $0x66] sm:$0xff]  ;;  %v2123_v54 = vld [vmem:[%s2791_s30 + $0x6e] sm:$0xff] }
 0x1a3   : > { %v1304_v15 = vpop.f32.mrf.mxu0  ;;  %v1109_v13 = vadd.f32 %v1053_v45, %v861_v8  ;;  %v1657_v8 = vpack.c.bf16 %v1625_v47, %v1624_v7  ;;  %v1627_v47 = vld [vmem:[%s2791_s30 + $0x6c] sm:$0xff] }
 0x1a4   : > { %2636 = vmatmul.msk.bf16.gmra.mxu1 %vm312_vm1, %v1655_v18 }
 0x1a5   : > { %2655 = vmatmul.msk.bf16.gmra.mxu2 %vm312_vm1, %v1656_v55  ;;  %v3276_v16 = vadd.f32 %v1301_v60, %v1109_v13 }
 0x1a6   : > { %2693 = vmatmul.msk.bf16.gmra.mxu0 %vm312_vm1, %v2152_v35  ;;  %2676 = vmatmul.msk.bf16.gmra.mxu3 %vm312_vm1, %v1906_v29  ;;  %v1876_v35 = vld [vmem:[%s2791_s30 + $0x75] sm:$0xff] }
 0x1a8   : > { %v808_v30 = vpop.f32.mrf.mxu2 }
 0x1a9   : > { %v862_v52 = vadd.f32 %v808_v30, %v597_v34  ;;  %v598_v45 = vpop.f32.mrf.mxu1  ;;  %v1066_v24 = vpop.f32.mrf.mxu3 }
 0x1aa   : > { %v599_v60 = vadd.f32 %v598_v45, %v2992_v33 }
 0x1ab   : > { %v1306_v50 = vpop.f32.mrf.mxu0  ;;  %v1110_v18 = vadd.f32 %v1056_v0, %v862_v52 }
 0x1ad   : > { %v3281_v53 = vadd.f32 %v1304_v15, %v1110_v18  ;;  %v1907_v15 = vpack.c.bf16 %v1877_v19, %v1876_v35  ;;  %v1626_v18 = vld [vmem:[%s2791_s30 + $0x64] sm:$0xff]  ;;  %v1879_v35 = vld [vmem:[%s2791_s30 + $0x8d] sm:$0xff] }
 0x1b0   : > { %v810_v14 = vpop.f32.mrf.mxu2 }
 0x1b1   : > { %v863_v25 = vadd.f32 %v810_v14, %v599_v60  ;;  %v601_v48 = vpop.f32.mrf.mxu1  ;;  %v1068_v0 = vpop.f32.mrf.mxu3 }
 0x1b2   : > { %v602_v29 = vadd.f32 %v601_v48, %v3008_v42  ;;  %v2154_v48 = vpack.c.bf16 %v2123_v54, %v2122_v22  ;;  %v2124_v22 = vld [vmem:[%s2791_s30 + $0x76] sm:$0xff]  ;;  %v2125_v54 = vld [vmem:[%s2791_s30 + $0x7e] sm:$0xff] }
 0x1b3   : > { %v1309_v21 = vpop.f32.mrf.mxu0  ;;  %v1111_v13 = vadd.f32 %v1058_v62, %v863_v25  ;;  %v1658_v25 = vpack.c.bf16 %v1627_v47, %v1626_v18  ;;  %v1629_v47 = vld [vmem:[%s2791_s30 + $0x7c] sm:$0xff] }
 0x1b4   : > { %2637 = vmatmul.msk.bf16.gmra.mxu1 %vm312_vm1, %v1656_v55 }
 0x1b5   : > { %2656 = vmatmul.msk.bf16.gmra.mxu2 %vm312_vm1, %v1657_v8  ;;  %v3292_v33 = vadd.f32 %v1306_v50, %v1111_v13 }
 0x1b6   : > { %2694 = vmatmul.msk.bf16.gmra.mxu0 %vm312_vm1, %v2153_v17  ;;  %2677 = vmatmul.msk.bf16.gmra.mxu3 %vm312_vm1, %v1907_v15  ;;  %v1878_v17 = vld [vmem:[%s2791_s30 + $0x85] sm:$0xff] }
 0x1b8   : > { %v813_v34 = vpop.f32.mrf.mxu2 }
 0x1b9   : > { %v864_v30 = vadd.f32 %v813_v34, %v602_v29  ;;  %v603_v62 = vpop.f32.mrf.mxu1  ;;  %v1071_v45 = vpop.f32.mrf.mxu3 }
 0x1ba   : > { %v604_v50 = vadd.f32 %v603_v62, %v3020_v51 }
 0x1bb   : > { %v1311_v52 = vpop.f32.mrf.mxu0  ;;  %v1112_v55 = vadd.f32 %v1061_v59, %v864_v30 }
 0x1bd   : > { %v3297_v7 = vadd.f32 %v1309_v21, %v1112_v55  ;;  %v1908_v21 = vpack.c.bf16 %v1879_v35, %v1878_v17  ;;  %v1628_v55 = vld [vmem:[%s2791_s30 + $0x74] sm:$0xff]  ;;  %v1881_v17 = vld [vmem:[%s2791_s30 + $0x9d] sm:$0xff] }
 0x1c0   : > { %v815_v60 = vpop.f32.mrf.mxu2 }
 0x1c1   : > { %v865_v42 = vadd.f32 %v815_v60, %v604_v50  ;;  %v606_v14 = vpop.f32.mrf.mxu1  ;;  %v1073_v59 = vpop.f32.mrf.mxu3 }
 0x1c2   : > { %v607_v15 = vadd.f32 %v606_v14, %v3034_v3  ;;  %v2155_v14 = vpack.c.bf16 %v2125_v54, %v2124_v22  ;;  %v2126_v22 = vld [vmem:[%s2791_s30 + $0x86] sm:$0xff]  ;;  %v2127_v54 = vld [vmem:[%s2791_s30 + $0x8e] sm:$0xff] }
 0x1c3   : > { %v1314_v19 = vpop.f32.mrf.mxu0  ;;  %v1113_v13 = vadd.f32 %v1063_v39, %v865_v42  ;;  %v1659_v42 = vpack.c.bf16 %v1629_v47, %v1628_v55  ;;  %v1631_v47 = vld [vmem:[%s2791_s30 + $0x8c] sm:$0xff] }
 0x1c4   : > { %2638 = vmatmul.msk.bf16.gmra.mxu1 %vm312_vm1, %v1657_v8 }
 0x1c5   : > { %2657 = vmatmul.msk.bf16.gmra.mxu2 %vm312_vm1, %v1658_v25  ;;  %v3308_v51 = vadd.f32 %v1311_v52, %v1113_v13 }
 0x1c6   : > { %2695 = vmatmul.msk.bf16.gmra.mxu0 %vm312_vm1, %v2154_v48  ;;  %2678 = vmatmul.msk.bf16.gmra.mxu3 %vm312_vm1, %v1908_v21  ;;  %v1880_v48 = vld [vmem:[%s2791_s30 + $0x95] sm:$0xff] }
 0x1c8   : > { %v818_v29 = vpop.f32.mrf.mxu2 }
 0x1c9   : > { %v866_v34 = vadd.f32 %v818_v29, %v607_v15  ;;  %v608_v39 = vpop.f32.mrf.mxu1  ;;  %v1076_v62 = vpop.f32.mrf.mxu3 }
 0x1ca   : > { %v609_v52 = vadd.f32 %v608_v39, %v3046_v20 }
 0x1cb   : > { %v1316_v30 = vpop.f32.mrf.mxu0  ;;  %v1114_v8 = vadd.f32 %v1066_v24, %v866_v34 }
 0x1cd   : > { %v3313_v18 = vadd.f32 %v1314_v19, %v1114_v8  ;;  %v1909_v19 = vpack.c.bf16 %v1881_v17, %v1880_v48  ;;  %v1630_v8 = vld [vmem:[%s2791_s30 + $0x84] sm:$0xff]  ;;  %v1883_v48 = vld [vmem:[%s2791_s30 + $0xad] sm:$0xff] }
 0x1d0   : > { %v820_v50 = vpop.f32.mrf.mxu2 }
 0x1d1   : > { %v867_v3 = vadd.f32 %v820_v50, %v609_v52  ;;  %v611_v60 = vpop.f32.mrf.mxu1  ;;  %v1078_v24 = vpop.f32.mrf.mxu3 }
 0x1d2   : > { %v612_v21 = vadd.f32 %v611_v60, %v2928_v58  ;;  %v2156_v60 = vpack.c.bf16 %v2127_v54, %v2126_v22  ;;  %v2128_v22 = vld [vmem:[%s2791_s30 + $0x96] sm:$0xff]  ;;  %v2129_v54 = vld [vmem:[%s2791_s30 + $0x9e] sm:$0xff] }
 0x1d3   : > { %v1319_v35 = vpop.f32.mrf.mxu0  ;;  %v1115_v13 = vadd.f32 %v1068_v0, %v867_v3  ;;  %v1660_v3 = vpack.c.bf16 %v1631_v47, %v1630_v8  ;;  %v1633_v47 = vld [vmem:[%s2791_s30 + $0x9c] sm:$0xff] }
 0x1d4   : > { %2639 = vmatmul.msk.bf16.gmra.mxu1 %vm312_vm1, %v1658_v25 }
 0x1d5   : > { %2658 = vmatmul.msk.bf16.gmra.mxu2 %vm312_vm1, %v1659_v42  ;;  %v3324_v20 = vadd.f32 %v1316_v30, %v1115_v13 }
 0x1d6   : > { %2696 = vmatmul.msk.bf16.gmra.mxu0 %vm312_vm1, %v2155_v14  ;;  %2679 = vmatmul.msk.bf16.gmra.mxu3 %vm312_vm1, %v1909_v19  ;;  %v1882_v14 = vld [vmem:[%s2791_s30 + $0xa5] sm:$0xff] }
 0x1d8   : > { %v823_v15 = vpop.f32.mrf.mxu2 }
 0x1d9   : > { %v868_v29 = vadd.f32 %v823_v15, %v612_v21  ;;  %v613_v0 = vpop.f32.mrf.mxu1  ;;  %v1081_v39 = vpop.f32.mrf.mxu3 }
 0x1da   : > { %v614_v30 = vadd.f32 %v613_v0, %v2942_v6 }
 0x1db   : > { %v1321_v34 = vpop.f32.mrf.mxu0  ;;  %v1116_v25 = vadd.f32 %v1071_v45, %v868_v29 }
 0x1dd   : > { %v3329_v55 = vadd.f32 %v1319_v35, %v1116_v25  ;;  %v1910_v35 = vpack.c.bf16 %v1883_v48, %v1882_v14  ;;  %v1632_v25 = vld [vmem:[%s2791_s30 + $0x94] sm:$0xff]  ;;  %v1885_v14 = vld [vmem:[%s2791_s30 + $0xbd] sm:$0xff] }
 0x1e0   : > { %v825_v52 = vpop.f32.mrf.mxu2 }
 0x1e1   : > { %v869_v58 = vadd.f32 %v825_v52, %v614_v30  ;;  %v616_v50 = vpop.f32.mrf.mxu1  ;;  %v1083_v45 = vpop.f32.mrf.mxu3 }
 0x1e2   : > { %v617_v19 = vadd.f32 %v616_v50, %v2957_v11  ;;  %v2157_v50 = vpack.c.bf16 %v2129_v54, %v2128_v22  ;;  %v2131_v22 = vld [vmem:[%s2791_s30 + $0xae] sm:$0xff] }
 0x1e3   : > { %v1324_v17 = vpop.f32.mrf.mxu0  ;;  %v1117_v13 = vadd.f32 %v1073_v59, %v869_v58  ;;  %v1661_v58 = vpack.c.bf16 %v1633_v47, %v1632_v25  ;;  %v1635_v47 = vld [vmem:[%s2791_s30 + $0xac] sm:$0xff] }
 0x1e4   : > { %2640 = vmatmul.msk.bf16.gmra.mxu1 %vm312_vm1, %v1659_v42 }
 0x1e5   : > { %2659 = vmatmul.msk.bf16.gmra.mxu2 %vm312_vm1, %v1660_v3  ;;  %v3340_v6 = vadd.f32 %v1321_v34, %v1117_v13 }
 0x1e6   : > { %2697 = vmatmul.msk.bf16.gmra.mxu0 %vm312_vm1, %v2156_v60  ;;  %2680 = vmatmul.msk.bf16.gmra.mxu3 %vm312_vm1, %v1910_v35  ;;  %v1884_v60 = vld [vmem:[%s2791_s30 + $0xb5] sm:$0xff] }
 0x1e8   : > { %v828_v21 = vpop.f32.mrf.mxu2 }
 0x1e9   : > { %v870_v15 = vadd.f32 %v828_v21, %v617_v19  ;;  %v618_v59 = vpop.f32.mrf.mxu1  ;;  %v1988_v0 = vpop.f32.mrf.mxu3 }
 0x1ea   : > { %v619_v34 = vadd.f32 %v618_v59, %v2971_v23 }
 0x1eb   : > { %v1326_v29 = vpop.f32.mrf.mxu0  ;;  %v1118_v42 = vadd.f32 %v1076_v62, %v870_v15 }
 0x1ed   : > { %v3345_v8 = vadd.f32 %v1324_v17, %v1118_v42  ;;  %v1911_v17 = vpack.c.bf16 %v1885_v14, %v1884_v60  ;;  %v1634_v42 = vld [vmem:[%s2791_s30 + $0xa4] sm:$0xff]  ;;  %v1887_v60 = vld [vmem:[%s2791_s30 + $0xcd] sm:$0xff] }
 0x1f0   : > { %v830_v30 = vpop.f32.mrf.mxu2 }
 0x1f1   : > { %v871_v11 = vadd.f32 %v830_v30, %v619_v34  ;;  %v621_v52 = vpop.f32.mrf.mxu1  ;;  %v3353_v62 = vpop.f32.mrf.mxu3 }
 0x1f2   : > { %v622_v35 = vadd.f32 %v621_v52, %v2986_v28 }
 0x1f3   : > { %v1329_v48 = vpop.f32.mrf.mxu0  ;;  %v1119_v13 = vadd.f32 %v1078_v24, %v871_v11  ;;  %v1662_v11 = vpack.c.bf16 %v1635_v47, %v1634_v42  ;;  %v1636_v42 = vld [vmem:[%s2791_s30 + $0xb4] sm:$0xff]  ;;  %v1637_v47 = vld [vmem:[%s2791_s30 + $0xbc] sm:$0xff] }
 0x1f4   : > { %2641 = vmatmul.msk.bf16.gmra.mxu1 %vm312_vm1, %v1660_v3 }
 0x1f5   : > { %2660 = vmatmul.msk.bf16.gmra.mxu2 %vm312_vm1, %v1661_v58  ;;  %v3358_v23 = vadd.f32 %v1326_v29, %v1119_v13  ;;  %v2130_v29 = vld [vmem:[%s2791_s30 + $0xa6] sm:$0xff] }
 0x1f6   : > { %2698 = vmatmul.msk.bf16.gmra.mxu0 %vm312_vm1, %v2157_v50  ;;  %2681 = vmatmul.msk.bf16.gmra.mxu3 %vm312_vm1, %v1911_v17  ;;  %v2158_v52 = vpack.c.bf16 %v2131_v22, %v2130_v29  ;;  %v1886_v50 = vld [vmem:[%s2791_s30 + $0xc5] sm:$0xff]  ;;  %v2132_v29 = vld [vmem:[%s2791_s30 + $0xb6] sm:$0xff] }
 0x1f7   : > { %v2133_v22 = vld [vmem:[%s2791_s30 + $0xbe] sm:$0xff] }
 0x1f8   : > { %v833_v19 = vpop.f32.mrf.mxu2 }
 0x1f9   : > { %v872_v24 = vadd.f32 %v833_v19, %v622_v35  ;;  %v623_v21 = vpop.f32.mrf.mxu1  ;;  %v3362_v59 = vpop.f32.mrf.mxu3 }
 0x1fa   : > { %v624_v28 = vadd.f32 %v623_v21, %v3000_v40 }
 0x1fb   : > { %v1331_v15 = vpop.f32.mrf.mxu0  ;;  %v1120_v3 = vadd.f32 %v1081_v39, %v872_v24 }
 0x1fd   : > { %v3365_v25 = vadd.f32 %v1329_v48, %v1120_v3  ;;  %v1912_v48 = vpack.c.bf16 %v1887_v60, %v1886_v50  ;;  %v3385_v3 = vstv %s2362_s16  ;;  %v1663_v50 = vpack.c.bf16 %v1637_v47, %v1636_v42 }
 0x1fe   : > { %v2159_v60 = vpack.c.bf16 %v2133_v22, %v2132_v29 }
 0x200   : > { %v835_v54 = vpop.f32.mrf.mxu2 }
 0x201   : > { %v873_v34 = vadd.f32 %v835_v54, %v624_v28  ;;  %v1492_v30 = vpop.f32.mrf.mxu1  ;;  %v3374_v13 = vpop.f32.mrf.mxu3 }
 0x202   : > { %v1582_v17 = vadd.f32 %v1492_v30, %v3061_v61  ;;  %v3390_v61 = vld [vmem:[%s3673_s3] ss:$0 sm:$0xff] }
 0x203   : > { %v2236_v14 = vpop.f32.mrf.mxu0  ;;  %v1121_v39 = vadd.f32 %v1083_v45, %v873_v34 }
 0x204   : > { %2642 = vmatmul.msk.bf16.gmra.mxu1 %vm312_vm1, %v1661_v58 }
 0x205   : > { %2661 = vmatmul.msk.bf16.gmra.mxu2 %vm312_vm1, %v1662_v11  ;;  %v3379_v40 = vadd.f32 %v1331_v15, %v1121_v39  ;;  %v1889_v39 = vld [vmem:[%s2791_s30 + $0xdd] sm:$0xff] }
 0x206   : > { %2699 = vmatmul.msk.bf16.gmra.mxu0 %vm312_vm1, %v2158_v52  ;;  %2682 = vmatmul.msk.bf16.gmra.mxu3 %vm312_vm1, %v1912_v48 }
 0x208   : > { %v1740_v45 = vpop.f32.mrf.mxu2 }
 0x209   : > { %v1830_v58 = vadd.f32 %v1740_v45, %v1582_v17  ;;  %v1494_v35 = vpop.f32.mrf.mxu1  ;;  %v3383_v21 = vpop.f32.mrf.mxu3 }
 0x20b   : > { %v2238_v19 = vpop.f32.mrf.mxu0  ;;  %v2078_v24 = vadd.f32 %v1988_v0, %v1830_v58  ;;  %v1583_v0 = vadd.f32 %v1494_v35, %v3074_v57 }
 0x20d   : > { %v2326_v15 = vadd.f32 %v2236_v14, %v2078_v24  ;;  %v1888_v14 = vld [vmem:[%s2791_s30 + $0xd5] sm:$0xff] }
 0x20e   : > { %v1913_v45 = vpack.c.bf16 %v1889_v39, %v1888_v14 }
 0x20f   : > { %v2364_v28 = vmul.f32 %v3385_v3, %v2326_v15 }
 0x210   : > { %v1742_v54 = vpop.f32.mrf.mxu2 }
 0x211   : > { %v2404_v34 = vadd.f32 %v3390_v61, %v2364_v28  ;;  %v1831_v30 = vadd.f32 %v1742_v54, %v1583_v0  ;;  %v1497_v52 = vpop.f32.mrf.mxu1  ;;  %v3408_v17 = vpop.f32.mrf.mxu3  ;;  %v1638_v28 = vld [vmem:[%s2791_s30 + $0xc4] sm:$0xff]  ;;  %v1639_v0 = vld [vmem:[%s2791_s30 + $0xcc] sm:$0xff] }
 0x212   : > { %v1584_v24 = vadd.f32 %v1497_v52, %v3081_v41  ;;  %v2134_v41 = vld [vmem:[%s2791_s30 + $0xc6] sm:$0xff]  ;;  %v2135_v54 = vld [vmem:[%s2791_s30 + $0xce] sm:$0xff] }
 0x213   : > { %v2241_v48 = vpop.f32.mrf.mxu0  ;;  %2440 = vst [vmem:[%s3401_s22] sm:$0xff] %v2404_v34  ;;  %v2079_v57 = vadd.f32 %v3353_v62, %v1831_v30 }
 0x214   : > { %2643 = vmatmul.msk.bf16.gmra.mxu1 %vm312_vm1, %v1662_v11 }
 0x215   : > { %v2327_v58 = vadd.f32 %v2238_v19, %v2079_v57  ;;  %2662 = vmatmul.msk.bf16.gmra.mxu2 %vm312_vm1, %v1663_v50  ;;  %v1664_v57 = vpack.c.bf16 %v1639_v0, %v1638_v28 }
 0x216   : > { %2700 = vmatmul.msk.bf16.gmra.mxu0 %vm312_vm1, %v2159_v60  ;;  %2683 = vmatmul.msk.bf16.gmra.mxu3 %vm312_vm1, %v1913_v45  ;;  %v1890_v45 = vld [vmem:[%s2791_s30 + $0xe5] sm:$0xff] }
 0x217   : > { %v2365_v35 = vmul.f32 %v3385_v3, %v2327_v58  ;;  %v1891_v58 = vld [vmem:[%s2791_s30 + $0xed] sm:$0xff] }
 0x218   : > { %v1745_v15 = vpop.f32.mrf.mxu2 }
 0x219   : > { %v2405_v62 = vadd.f32 %v3390_v61, %v2365_v35  ;;  %v1832_v11 = vadd.f32 %v1745_v15, %v1584_v24  ;;  %v1499_v42 = vpop.f32.mrf.mxu1  ;;  %v3419_v29 = vpop.f32.mrf.mxu3  ;;  %v1914_v15 = vpack.c.bf16 %v1891_v58, %v1890_v45  ;;  %v1892_v58 = vld [vmem:[%s2791_s30 + $0xf5] sm:$0xff] }
 0x21a   : > { %v1585_v30 = vadd.f32 %v1499_v42, %v3094_v10 }
 0x21b   : > { %v2243_v47 = vpop.f32.mrf.mxu0  ;;  %2441 = vst [vmem:[%s3401_s22 + $0x8] sm:$0xff] %v2405_v62  ;;  %v2080_v19 = vadd.f32 %v3362_v59, %v1832_v11  ;;  %v2160_v59 = vpack.c.bf16 %v2135_v54, %v2134_v41  ;;  %v1640_v41 = vld [vmem:[%s2791_s30 + $0xd4] sm:$0xff]  ;;  %v1641_v54 = vld [vmem:[%s2791_s30 + $0xdc] sm:$0xff] }
 0x21c   : > { %v1665_v45 = vpack.c.bf16 %v1641_v54, %v1640_v41  ;;  %v1642_v41 = vld [vmem:[%s2791_s30 + $0xe4] sm:$0xff]  ;;  %v1643_v54 = vld [vmem:[%s2791_s30 + $0xec] sm:$0xff] }
 0x21d   : > { %v2328_v22 = vadd.f32 %v2241_v48, %v2080_v19 }
 0x21f   : > { %v2366_v34 = vmul.f32 %v3385_v3, %v2328_v22 }
 0x220   : > { %v1747_v52 = vpop.f32.mrf.mxu2 }
 0x221   : > { %v2406_v60 = vadd.f32 %v3390_v61, %v2366_v34  ;;  %v1833_v14 = vadd.f32 %v1747_v52, %v1585_v30  ;;  %v1502_v39 = vpop.f32.mrf.mxu1  ;;  %v3432_v24 = vpop.f32.mrf.mxu3  ;;  %v2137_v34 = vld [vmem:[%s2791_s30 + $0xde] sm:$0xff] }
 0x222   : > { %v1586_v11 = vadd.f32 %v1502_v39, %v3101_v2  ;;  %v2136_v2 = vld [vmem:[%s2791_s30 + $0xd6] sm:$0xff] }
 0x223   : > { %v2246_v35 = vpop.f32.mrf.mxu0  ;;  %2442 = vst [vmem:[%s3401_s22 + $0x10] sm:$0xff] %v2406_v60  ;;  %v2081_v48 = vadd.f32 %v3374_v13, %v1833_v14 }
 0x224   : > { %2644 = vmatmul.msk.bf16.gmra.mxu1 %vm312_vm1, %v1663_v50 }
 0x225   : > { %v2329_v10 = vadd.f32 %v2243_v47, %v2081_v48  ;;  %2663 = vmatmul.msk.bf16.gmra.mxu2 %vm312_vm1, %v1664_v57  ;;  %v1893_v48 = vld [vmem:[%s2791_s30 + $0xfd] sm:$0xff] }
 0x226   : > { %2701 = vmatmul.msk.bf16.gmra.mxu0 %vm312_vm1, %v2160_v59  ;;  %2684 = vmatmul.msk.bf16.gmra.mxu3 %vm312_vm1, %v1914_v15 }
 0x227   : > { %v2367_v62 = vmul.f32 %v3385_v3, %v2329_v10 }
 0x228   : > { %v1750_v42 = vpop.f32.mrf.mxu2 }
 0x229   : > { %v2407_v13 = vadd.f32 %v3390_v61, %v2367_v62  ;;  %v1834_v50 = vadd.f32 %v1750_v42, %v1586_v11  ;;  %v1504_v19 = vpop.f32.mrf.mxu1  ;;  %v3443_v28 = vpop.f32.mrf.mxu3  ;;  %v1915_v62 = vpack.c.bf16 %v1893_v48, %v1892_v58  ;;  %v1895_v58 = vld [vmem:[%s2791_s30 + $0x10d] sm:$0xff] }
 0x22a   : > { %v1587_v52 = vadd.f32 %v1504_v19, %v3114_v27 }
 0x22b   : > { %v2248_v22 = vpop.f32.mrf.mxu0  ;;  %2443 = vst [vmem:[%s3401_s22 + $0x18] sm:$0xff] %v2407_v13  ;;  %v2082_v47 = vadd.f32 %v3383_v21, %v1834_v50  ;;  %v2161_v21 = vpack.c.bf16 %v2137_v34, %v2136_v2  ;;  %v2139_v2 = vld [vmem:[%s2791_s30 + $0xee] sm:$0xff] }
 0x22d   : > { %v2330_v0 = vadd.f32 %v2246_v35, %v2082_v47 }
 0x22f   : > { %v2368_v30 = vmul.f32 %v3385_v3, %v2330_v0 }
 0x230   : > { %v1752_v60 = vpop.f32.mrf.mxu2 }
 0x231   : > { %v2408_v14 = vadd.f32 %v3390_v61, %v2368_v30  ;;  %v1835_v39 = vadd.f32 %v1752_v60, %v1587_v52  ;;  %v1507_v59 = vpop.f32.mrf.mxu1  ;;  %v3456_v10 = vpop.f32.mrf.mxu3 }
 0x232   : > { %v1588_v42 = vadd.f32 %v1507_v59, %v3121_v36  ;;  %v2138_v36 = vld [vmem:[%s2791_s30 + $0xe6] sm:$0xff]  ;;  %v1666_v59 = vpack.c.bf16 %v1643_v54, %v1642_v41  ;;  %v2141_v41 = vld [vmem:[%s2791_s30 + $0xfe] sm:$0xff] }
 0x233   : > { %v2251_v15 = vpop.f32.mrf.mxu0  ;;  %2444 = vst [vmem:[%s3401_s22 + $0x20] sm:$0xff] %v2408_v14  ;;  %v2083_v35 = vadd.f32 %v3408_v17, %v1835_v39 }
 0x234   : > { %2645 = vmatmul.msk.bf16.gmra.mxu1 %vm312_vm1, %v1664_v57 }
 0x235   : > { %v2331_v27 = vadd.f32 %v2248_v22, %v2083_v35  ;;  %2664 = vmatmul.msk.bf16.gmra.mxu2 %vm312_vm1, %v1665_v45 }
 0x236   : > { %2702 = vmatmul.msk.bf16.gmra.mxu0 %vm312_vm1, %v2161_v21  ;;  %2685 = vmatmul.msk.bf16.gmra.mxu3 %vm312_vm1, %v1915_v62  ;;  %v1894_v21 = vld [vmem:[%s2791_s30 + $0x105] sm:$0xff] }
 0x237   : > { %v2369_v11 = vmul.f32 %v3385_v3, %v2331_v27  ;;  %v1916_v62 = vpack.c.bf16 %v1895_v58, %v1894_v21 }
 0x238   : > { %v1755_v13 = vpop.f32.mrf.mxu2 }
 0x239   : > { %v2409_v17 = vadd.f32 %v3390_v61, %v2369_v11  ;;  %v1836_v57 = vadd.f32 %v1755_v13, %v1588_v42  ;;  %v1509_v50 = vpop.f32.mrf.mxu1  ;;  %v3467_v47 = vpop.f32.mrf.mxu3 }
 0x23a   : > { %v1589_v30 = vadd.f32 %v1509_v50, %v3134_v44 }
 0x23b   : > { %v2253_v19 = vpop.f32.mrf.mxu0  ;;  %2445 = vst [vmem:[%s3401_s22 + $0x28] sm:$0xff] %v2409_v17  ;;  %v2084_v22 = vadd.f32 %v3419_v29, %v1836_v57  ;;  %v2162_v29 = vpack.c.bf16 %v2139_v2, %v2138_v36 }
 0x23d   : > { %v2332_v0 = vadd.f32 %v2251_v15, %v2084_v22  ;;  %v1644_v22 = vld [vmem:[%s2791_s30 + $0xf4] sm:$0xff] }
 0x23f   : > { %v2370_v34 = vmul.f32 %v3385_v3, %v2332_v0  ;;  %v1645_v0 = vld [vmem:[%s2791_s30 + $0xfc] sm:$0xff] }
 0x240   : > { %v1757_v52 = vpop.f32.mrf.mxu2 }
 0x241   : > { %v2410_v60 = vadd.f32 %v3390_v61, %v2370_v34  ;;  %v1837_v14 = vadd.f32 %v1757_v52, %v1589_v30  ;;  %v1512_v39 = vpop.f32.mrf.mxu1  ;;  %v3480_v35 = vpop.f32.mrf.mxu3 }
 0x242   : > { %v1590_v11 = vadd.f32 %v1512_v39, %v3141_v32  ;;  %v2140_v32 = vld [vmem:[%s2791_s30 + $0xf6] sm:$0xff] }
 0x243   : > { %v2256_v48 = vpop.f32.mrf.mxu0  ;;  %2446 = vst [vmem:[%s3401_s22 + $0x30] sm:$0xff] %v2410_v60  ;;  %v2085_v15 = vadd.f32 %v3432_v24, %v1837_v14  ;;  %v1667_v60 = vpack.c.bf16 %v1645_v0, %v1644_v22  ;;  %v1896_v14 = vld [vmem:[%s2791_s30 + $0x115] sm:$0xff]  ;;  %v1897_v39 = vld [vmem:[%s2791_s30 + $0x11d] sm:$0xff] }
 0x244   : > { %2646 = vmatmul.msk.bf16.gmra.mxu1 %vm312_vm1, %v1665_v45 }
 0x245   : > { %v2333_v44 = vadd.f32 %v2253_v19, %v2085_v15  ;;  %2665 = vmatmul.msk.bf16.gmra.mxu2 %vm312_vm1, %v1666_v59 }
 0x246   : > { %2703 = vmatmul.msk.bf16.gmra.mxu0 %vm312_vm1, %v2162_v29  ;;  %2686 = vmatmul.msk.bf16.gmra.mxu3 %vm312_vm1, %v1916_v62 }
 0x247   : > { %v2371_v27 = vmul.f32 %v3385_v3, %v2333_v44 }
 0x248   : > { %v1760_v42 = vpop.f32.mrf.mxu2 }
 0x249   : > { %v2411_v24 = vadd.f32 %v3390_v61, %v2371_v27  ;;  %v1838_v45 = vadd.f32 %v1760_v42, %v1590_v11  ;;  %v1514_v13 = vpop.f32.mrf.mxu1  ;;  %v3491_v50 = vpop.f32.mrf.mxu3 }
 0x24a   : > { %v1591_v36 = vadd.f32 %v1514_v13, %v3154_v12  ;;  %v1646_v13 = vld [vmem:[%s2791_s30 + $0x104] sm:$0xff] }
 0x24b   : > { %v2258_v17 = vpop.f32.mrf.mxu0  ;;  %2447 = vst [vmem:[%s3401_s22 + $0x38] sm:$0xff] %v2411_v24  ;;  %v2086_v57 = vadd.f32 %v3443_v28, %v1838_v45  ;;  %v2163_v28 = vpack.c.bf16 %v2141_v41, %v2140_v32 }
 0x24d   : > { %v2334_v19 = vadd.f32 %v2256_v48, %v2086_v57  ;;  %v1917_v48 = vpack.c.bf16 %v1897_v39, %v1896_v14  ;;  %v2143_v57 = vld [vmem:[%s2791_s30 + $0x10e] sm:$0xff] }
 0x24f   : > { %v2372_v54 = vmul.f32 %v3385_v3, %v2334_v19 }
 0x250   : > { %v1762_v2 = vpop.f32.mrf.mxu2 }
 0x251   : > { %v2412_v34 = vadd.f32 %v3390_v61, %v2372_v54  ;;  %v1839_v30 = vadd.f32 %v1762_v2, %v1591_v36  ;;  %v1517_v52 = vpop.f32.mrf.mxu1  ;;  %v3504_v58 = vpop.f32.mrf.mxu3  ;;  %v1898_v2 = vld [vmem:[%s2791_s30 + $0x125] sm:$0xff] }
 0x252   : > { %v1592_v62 = vadd.f32 %v1517_v52, %v3161_v31  ;;  %v2142_v31 = vld [vmem:[%s2791_s30 + $0x106] sm:$0xff] }
 0x253   : > { %v2261_v29 = vpop.f32.mrf.mxu0  ;;  %2448 = vst [vmem:[%s3401_s22 + $0x40] sm:$0xff] %v2412_v34  ;;  %v2087_v21 = vadd.f32 %v3456_v10, %v1839_v30  ;;  %v1899_v34 = vld [vmem:[%s2791_s30 + $0x12d] sm:$0xff] }
 0x254   : > { %2647 = vmatmul.msk.bf16.gmra.mxu1 %vm312_vm1, %v1666_v59  ;;  %v1918_v14 = vpack.c.bf16 %v1899_v34, %v1898_v2 }
 0x255   : > { %v2335_v12 = vadd.f32 %v2258_v17, %v2087_v21  ;;  %2666 = vmatmul.msk.bf16.gmra.mxu2 %vm312_vm1, %v1667_v60  ;;  %v1647_v17 = vld [vmem:[%s2791_s30 + $0x10c] sm:$0xff] }
 0x256   : > { %2704 = vmatmul.msk.bf16.gmra.mxu0 %vm312_vm1, %v2163_v28  ;;  %2687 = vmatmul.msk.bf16.gmra.mxu3 %vm312_vm1, %v1917_v48  ;;  %v1668_v36 = vpack.c.bf16 %v1647_v17, %v1646_v13 }
 0x257   : > { %v2373_v15 = vmul.f32 %v3385_v3, %v2335_v12 }
 0x258   : > { %v1765_v44 = vpop.f32.mrf.mxu2 }
 0x259   : > { %v2413_v10 = vadd.f32 %v3390_v61, %v2373_v15  ;;  %v1840_v59 = vadd.f32 %v1765_v44, %v1592_v62  ;;  %v1519_v27 = vpop.f32.mrf.mxu1  ;;  %v3515_v24 = vpop.f32.mrf.mxu3 }
 0x25a   : > { %v1593_v22 = vadd.f32 %v1519_v27, %v3174_v56  ;;  %v2145_v27 = vld [vmem:[%s2791_s30 + $0x11e] sm:$0xff] }
 0x25b   : > { %v2263_v11 = vpop.f32.mrf.mxu0  ;;  %2449 = vst [vmem:[%s3401_s22 + $0x48] sm:$0xff] %v2413_v10  ;;  %v2088_v42 = vadd.f32 %v3467_v47, %v1840_v59  ;;  %v2164_v47 = vpack.c.bf16 %v2143_v57, %v2142_v31  ;;  %v1648_v10 = vld [vmem:[%s2791_s30 + $0x114] sm:$0xff]  ;;  %v1649_v59 = vld [vmem:[%s2791_s30 + $0x11c] sm:$0xff] }
 0x25c   : > { %v1669_v57 = vpack.c.bf16 %v1649_v59, %v1648_v10 }
 0x25d   : > { %v2336_v45 = vadd.f32 %v2261_v29, %v2088_v42 }
 0x25f   : > { %v2374_v19 = vmul.f32 %v3385_v3, %v2336_v45 }
 0x260   : > { %v1767_v0 = vpop.f32.mrf.mxu2 }
 0x261   : > { %v2414_v32 = vadd.f32 %v3390_v61, %v2374_v19  ;;  %v1841_v41 = vadd.f32 %v1767_v0, %v1593_v22  ;;  %v1522_v54 = vpop.f32.mrf.mxu1  ;;  %v3528_v28 = vpop.f32.mrf.mxu3  ;;  %v1900_v19 = vld [vmem:[%s2791_s30 + $0x135] sm:$0xff]  ;;  %v1901_v22 = vld [vmem:[%s2791_s30 + $0x13d] sm:$0xff] }
 0x262   : > { %v1594_v29 = vadd.f32 %v1522_v54, %v3181_v37  ;;  %v2144_v37 = vld [vmem:[%s2791_s30 + $0x116] sm:$0xff]  ;;  %v1919_v54 = vpack.c.bf16 %v1901_v22, %v1900_v19 }
 0x263   : > { %v2266_v30 = vpop.f32.mrf.mxu0  ;;  %2450 = vst [vmem:[%s3401_s22 + $0x50] sm:$0xff] %v2414_v32  ;;  %v2089_v52 = vadd.f32 %v3480_v35, %v1841_v41 }
 0x264   : > { %2648 = vmatmul.msk.bf16.gmra.mxu1 %vm312_vm1, %v1667_v60 }
 0x265   : > { %v2337_v56 = vadd.f32 %v2263_v11, %v2089_v52  ;;  %2667 = vmatmul.msk.bf16.gmra.mxu2 %vm312_vm1, %v1668_v36 }
 0x266   : > { %2705 = vmatmul.msk.bf16.gmra.mxu0 %vm312_vm1, %v2164_v47  ;;  %2688 = vmatmul.msk.bf16.gmra.mxu3 %vm312_vm1, %v1918_v14 }
 0x267   : > { %v2375_v39 = vmul.f32 %v3385_v3, %v2337_v56 }
 0x268   : > { %v1770_v21 = vpop.f32.mrf.mxu2 }
 0x269   : > { %v2415_v35 = vadd.f32 %v3390_v61, %v2375_v39  ;;  %v1842_v60 = vadd.f32 %v1770_v21, %v1594_v29  ;;  %v1524_v48 = vpop.f32.mrf.mxu1  ;;  %v3539_v62 = vpop.f32.mrf.mxu3  ;;  %v1650_v29 = vld [vmem:[%s2791_s30 + $0x124] sm:$0xff]  ;;  %v1651_v21 = vld [vmem:[%s2791_s30 + $0x12c] sm:$0xff] }
 0x26a   : > { %v1595_v42 = vadd.f32 %v1524_v48, %v3192_v9  ;;  %v1670_v59 = vpack.c.bf16 %v1651_v21, %v1650_v29 }
 0x26b   : > { %v2268_v12 = vpop.f32.mrf.mxu0  ;;  %2451 = vst [vmem:[%s3401_s22 + $0x58] sm:$0xff] %v2415_v35  ;;  %v2090_v15 = vadd.f32 %v3491_v50, %v1842_v60  ;;  %v2165_v50 = vpack.c.bf16 %v2145_v27, %v2144_v37  ;;  %v2146_v35 = vld [vmem:[%s2791_s30 + $0x126] sm:$0xff]  ;;  %v2147_v60 = vld [vmem:[%s2791_s30 + $0x12e] sm:$0xff] }
 0x26c   : > { %v2166_v37 = vpack.c.bf16 %v2147_v60, %v2146_v35 }
 0x26d   : > { %v2338_v44 = vadd.f32 %v2266_v30, %v2090_v15 }
 0x26f   : > { %v2376_v11 = vmul.f32 %v3385_v3, %v2338_v44 }
 0x270   : > { %v1772_v45 = vpop.f32.mrf.mxu2 }
 0x271   : > { %v2416_v13 = vadd.f32 %v3390_v61, %v2376_v11  ;;  %v1843_v17 = vadd.f32 %v1772_v45, %v1595_v42  ;;  %v1527_v31 = vpop.f32.mrf.mxu1  ;;  %v3552_v41 = vpop.f32.mrf.mxu3 }
 0x272   : > { %v1596_v2 = vadd.f32 %v1527_v31, %v3198_v49 }
 0x273   : > { %v2271_v0 = vpop.f32.mrf.mxu0  ;;  %2452 = vst [vmem:[%s3401_s22 + $0x60] sm:$0xff] %v2416_v13  ;;  %v2091_v32 = vadd.f32 %v3504_v58, %v1843_v17 }
 0x274   : > { %2649 = vmatmul.msk.bf16.gmra.mxu1 %vm312_vm1, %v1668_v36 }
 0x275   : > { %v2339_v9 = vadd.f32 %v2268_v12, %v2091_v32  ;;  %2668 = vmatmul.msk.bf16.gmra.mxu2 %vm312_vm1, %v1669_v57  ;;  %v1653_v32 = vld [vmem:[%s2791_s30 + $0x13c] sm:$0xff] }
 0x276   : > { %2706 = vmatmul.msk.bf16.gmra.mxu0 %vm312_vm1, %v2165_v50  ;;  %2689 = vmatmul.msk.bf16.gmra.mxu3 %vm312_vm1, %v1919_v54  ;;  %v2148_v54 = vld [vmem:[%s2791_s30 + $0x136] sm:$0xff] }
 0x277   : > { %v2377_v47 = vmul.f32 %v3385_v3, %v2339_v9  ;;  %v2149_v9 = vld [vmem:[%s2791_s30 + $0x13e] sm:$0xff] }
 0x278   : > { %v1775_v34 = vpop.f32.mrf.mxu2 }
 0x279   : > { %v2417_v58 = vadd.f32 %v3390_v61, %v2377_v47  ;;  %v1844_v36 = vadd.f32 %v1775_v34, %v1596_v2  ;;  %v1529_v30 = vpop.f32.mrf.mxu1  ;;  %v2033_v56 = vpop.f32.mrf.mxu3 }
 0x27a   : > { %v1597_v48 = vadd.f32 %v1529_v30, %v3209_v26 }
 0x27b   : > { %v2273_v52 = vpop.f32.mrf.mxu0  ;;  %2453 = vst [vmem:[%s3401_s22 + $0x68] sm:$0xff] %v2417_v58  ;;  %v2092_v14 = vadd.f32 %v3515_v24, %v1844_v36 }
 0x27d   : > { %v2340_v39 = vadd.f32 %v2271_v0, %v2092_v14  ;;  %v1652_v0 = vld [vmem:[%s2791_s30 + $0x134] sm:$0xff] }
 0x27e   : > { %v1671_v30 = vpack.c.bf16 %v1653_v32, %v1652_v0 }
 0x27f   : > { %v2378_v49 = vmul.f32 %v3385_v3, %v2340_v39 }
 0x280   : > { %v1777_v12 = vpop.f32.mrf.mxu2 }
 0x281   : > { %v2418_v15 = vadd.f32 %v3390_v61, %v2378_v49  ;;  %v1845_v44 = vadd.f32 %v1777_v12, %v1597_v48  ;;  %v1532_v10 = vpop.f32.mrf.mxu1  ;;  %v2035_v11 = vpop.f32.mrf.mxu3 }
 0x282   : > { %v1598_v45 = vadd.f32 %v1532_v10, %v3215_v1 }
 0x283   : > { %v2276_v24 = vpop.f32.mrf.mxu0  ;;  %2454 = vst [vmem:[%s3401_s22 + $0x70] sm:$0xff] %v2418_v15  ;;  %v2093_v27 = vadd.f32 %v3528_v28, %v1845_v44 }
 0x284   : > { %2650 = vmatmul.msk.bf16.gmra.mxu1 %vm312_vm1, %v1669_v57 }
 0x285   : > { %v2341_v42 = vadd.f32 %v2273_v52, %v2093_v27  ;;  %2669 = vmatmul.msk.bf16.gmra.mxu2 %vm312_vm1, %v1670_v59  ;;  %v2167_v52 = vpack.c.bf16 %v2149_v9, %v2148_v54 }
 0x286   : > { %2707 = vmatmul.msk.bf16.gmra.mxu0 %vm312_vm1, %v2166_v37 }
 0x287   : > { %v2379_v26 = vmul.f32 %v3385_v3, %v2341_v42 }
 0x288   : > { %v1780_v13 = vpop.f32.mrf.mxu2 }
 0x289   : > { %v2419_v17 = vadd.f32 %v3390_v61, %v2379_v26  ;;  %v1846_v28 = vadd.f32 %v1780_v13, %v1598_v45  ;;  %v1534_v31 = vpop.f32.mrf.mxu1  ;;  %v2038_v19 = vpop.f32.mrf.mxu3 }
 0x28a   : > { %v1599_v1 = vadd.f32 %v1534_v31, %v3226_v43 }
 0x28b   : > { %v2278_v50 = vpop.f32.mrf.mxu0  ;;  %2455 = vst [vmem:[%s3401_s22 + $0x78] sm:$0xff] %v2419_v17  ;;  %v2094_v57 = vadd.f32 %v3539_v62, %v1846_v28 }
 0x28d   : > { %v2342_v22 = vadd.f32 %v2276_v24, %v2094_v57 }
 0x28f   : > { %v2380_v47 = vmul.f32 %v3385_v3, %v2342_v22 }
 0x290   : > { %v1782_v2 = vpop.f32.mrf.mxu2 }
 0x291   : > { %v2420_v34 = vadd.f32 %v3390_v61, %v2380_v47  ;;  %v1847_v58 = vadd.f32 %v1782_v2, %v1599_v1  ;;  %v1537_v36 = vpop.f32.mrf.mxu1  ;;  %v2040_v43 = vpop.f32.mrf.mxu3 }
 0x292   : > { %v1600_v21 = vadd.f32 %v1537_v36, %v3233_v46 }
 0x293   : > { %v2281_v62 = vpop.f32.mrf.mxu0  ;;  %2456 = vst [vmem:[%s3401_s22 + $0x80] sm:$0xff] %v2420_v34  ;;  %v2095_v14 = vadd.f32 %v3552_v41, %v1847_v58 }
 0x294   : > { %2651 = vmatmul.msk.bf16.gmra.mxu1 %vm312_vm1, %v1670_v59 }
 0x295   : > { %v2343_v39 = vadd.f32 %v2278_v50, %v2095_v14  ;;  %2670 = vmatmul.msk.bf16.gmra.mxu2 %vm312_vm1, %v1671_v30 }
 0x296   : > { %2708 = vmatmul.msk.bf16.gmra.mxu0 %vm312_vm1, %v2167_v52 }
 0x297   : > { %v2381_v29 = vmul.f32 %v3385_v3, %v2343_v39 }
 0x298   : > { %v1785_v35 = vpop.f32.mrf.mxu2 }
 0x299   : > { %v2421_v60 = vadd.f32 %v3390_v61, %v2381_v29  ;;  %v1848_v49 = vadd.f32 %v1785_v35, %v1600_v21  ;;  %v1539_v48 = vpop.f32.mrf.mxu1  ;;  %v2043_v37 = vpop.f32.mrf.mxu3 }
 0x29a   : > { %v1601_v10 = vadd.f32 %v1539_v48, %v3244_v4 }
 0x29b   : > { %v2283_v12 = vpop.f32.mrf.mxu0  ;;  %2457 = vst [vmem:[%s3401_s22 + $0x88] sm:$0xff] %v2421_v60  ;;  %v2096_v41 = vadd.f32 %v2033_v56, %v1848_v49 }
 0x29d   : > { %v2344_v15 = vadd.f32 %v2281_v62, %v2096_v41 }
 0x29f   : > { %v2382_v44 = vmul.f32 %v3385_v3, %v2344_v15 }
 0x2a0   : > { %v1787_v59 = vpop.f32.mrf.mxu2 }
 0x2a1   : > { %v2422_v24 = vadd.f32 %v3390_v61, %v2382_v44  ;;  %v1849_v46 = vadd.f32 %v1787_v59, %v1601_v10  ;;  %v1542_v27 = vpop.f32.mrf.mxu1  ;;  %v2045_v57 = vpop.f32.mrf.mxu3 }
 0x2a2   : > { %v1602_v56 = vadd.f32 %v1542_v27, %v3249_v5 }
 0x2a3   : > { %v2286_v42 = vpop.f32.mrf.mxu0  ;;  %2458 = vst [vmem:[%s3401_s22 + $0x90] sm:$0xff] %v2422_v24  ;;  %v2097_v26 = vadd.f32 %v2035_v11, %v1849_v46 }
 0x2a5   : > { %v2345_v45 = vadd.f32 %v2283_v12, %v2097_v26 }
 0x2a7   : > { %v2383_v13 = vmul.f32 %v3385_v3, %v2345_v45 }
 0x2a8   : > { %v1790_v17 = vpop.f32.mrf.mxu2 }
 0x2a9   : > { %v2423_v28 = vadd.f32 %v3390_v61, %v2383_v13  ;;  %v1850_v4 = vadd.f32 %v1790_v17, %v1602_v56  ;;  %v1544_v31 = vpop.f32.mrf.mxu1  ;;  %v2048_v34 = vpop.f32.mrf.mxu3 }
 0x2aa   : > { %v1603_v11 = vadd.f32 %v1544_v31, %v3260_v63 }
 0x2ab   : > { %v2288_v50 = vpop.f32.mrf.mxu0  ;;  %2459 = vst [vmem:[%s3401_s22 + $0x98] sm:$0xff] %v2423_v28  ;;  %v2098_v22 = vadd.f32 %v2038_v19, %v1850_v4 }
 0x2ad   : > { %v2346_v0 = vadd.f32 %v2286_v42, %v2098_v22 }
 0x2af   : > { %v2384_v32 = vmul.f32 %v3385_v3, %v2346_v0 }
 0x2b0   : > { %v1792_v54 = vpop.f32.mrf.mxu2 }
 0x2b1   : > { %v2424_v9 = vadd.f32 %v3390_v61, %v2384_v32  ;;  %v1851_v5 = vadd.f32 %v1792_v54, %v1603_v11  ;;  %v1547_v47 = vpop.f32.mrf.mxu1  ;;  %v2050_v21 = vpop.f32.mrf.mxu3 }
 0x2b2   : > { %v1604_v19 = vadd.f32 %v1547_v47, %v3265_v38 }
 0x2b3   : > { %v2291_v1 = vpop.f32.mrf.mxu0  ;;  %2460 = vst [vmem:[%s3401_s22 + $0xa0] sm:$0xff] %v2424_v9  ;;  %v2099_v2 = vadd.f32 %v2040_v43, %v1851_v5 }
 0x2b5   : > { %v2347_v58 = vadd.f32 %v2288_v50, %v2099_v2 }
 0x2b7   : > { %v2385_v36 = vmul.f32 %v3385_v3, %v2347_v58 }
 0x2b8   : > { %v1795_v30 = vpop.f32.mrf.mxu2 }
 0x2b9   : > { %v2425_v52 = vadd.f32 %v3390_v61, %v2385_v36  ;;  %v1852_v63 = vadd.f32 %v1795_v30, %v1604_v19  ;;  %v1549_v62 = vpop.f32.mrf.mxu1 }
 0x2ba   : > { %v1605_v43 = vadd.f32 %v1549_v62, %v3276_v16 }
 0x2bb   : > { %v2293_v14 = vpop.f32.mrf.mxu0  ;;  %2461 = vst [vmem:[%s3401_s22 + $0xa8] sm:$0xff] %v2425_v52  ;;  %v2100_v39 = vadd.f32 %v2043_v37, %v1852_v63  ;;  %v2053_v37 = vpop.f32.mrf.mxu3 }
 0x2bd   : > { %v2348_v29 = vadd.f32 %v2291_v1, %v2100_v39 }
 0x2bf   : > { %v2386_v35 = vmul.f32 %v3385_v3, %v2348_v29 }
 0x2c0   : > { %v1797_v60 = vpop.f32.mrf.mxu2 }
 0x2c1   : > { %v2426_v49 = vadd.f32 %v3390_v61, %v2386_v35  ;;  %v1853_v38 = vadd.f32 %v1797_v60, %v1605_v43  ;;  %v1552_v48 = vpop.f32.mrf.mxu1 }
 0x2c2   : > { %v1606_v10 = vadd.f32 %v1552_v48, %v3281_v53 }
 0x2c3   : > { %v2296_v12 = vpop.f32.mrf.mxu0  ;;  %2462 = vst [vmem:[%s3401_s22 + $0xb0] sm:$0xff] %v2426_v49  ;;  %v2101_v41 = vadd.f32 %v2045_v57, %v1853_v38  ;;  %v2055_v31 = vpop.f32.mrf.mxu3 }
 0x2c5   : > { %v2349_v15 = vadd.f32 %v2293_v14, %v2101_v41 }
 0x2c7   : > { %v2387_v44 = vmul.f32 %v3385_v3, %v2349_v15 }
 0x2c8   : > { %v1800_v59 = vpop.f32.mrf.mxu2 }
 0x2c9   : > { %v2427_v24 = vadd.f32 %v3390_v61, %v2387_v44  ;;  %v1854_v16 = vadd.f32 %v1800_v59, %v1606_v10  ;;  %v1554_v46 = vpop.f32.mrf.mxu1 }
 0x2ca   : > { %v1607_v13 = vadd.f32 %v1554_v46, %v3292_v33 }
 0x2cb   : > { %v2298_v27 = vpop.f32.mrf.mxu0  ;;  %2463 = vst [vmem:[%s3401_s22 + $0xb8] sm:$0xff] %v2427_v24  ;;  %v2102_v42 = vadd.f32 %v2048_v34, %v1854_v16  ;;  %v2058_v47 = vpop.f32.mrf.mxu3 }
 0x2cd   : > { %v2350_v26 = vadd.f32 %v2296_v12, %v2102_v42 }
 0x2cf   : > { %v2388_v45 = vmul.f32 %v3385_v3, %v2350_v26 }
 0x2d0   : > { %v1802_v56 = vpop.f32.mrf.mxu2 }
 0x2d1   : > { %v2428_v17 = vadd.f32 %v3390_v61, %v2388_v45  ;;  %v1855_v53 = vadd.f32 %v1802_v56, %v1607_v13  ;;  %v1557_v28 = vpop.f32.mrf.mxu1 }
 0x2d2   : > { %v1608_v0 = vadd.f32 %v1557_v28, %v3297_v7 }
 0x2d3   : > { %v2301_v4 = vpop.f32.mrf.mxu0  ;;  %2464 = vst [vmem:[%s3401_s22 + $0xc0] sm:$0xff] %v2428_v17  ;;  %v2103_v50 = vadd.f32 %v2050_v21, %v1855_v53  ;;  %v2060_v62 = vpop.f32.mrf.mxu3 }
 0x2d5   : > { %v2351_v57 = vadd.f32 %v2298_v27, %v2103_v50 }
 0x2d7   : > { %v2389_v22 = vmul.f32 %v3385_v3, %v2351_v57 }
 0x2d8   : > { %v1805_v32 = vpop.f32.mrf.mxu2 }
 0x2d9   : > { %v2429_v11 = vadd.f32 %v3390_v61, %v2389_v22  ;;  %v1856_v33 = vadd.f32 %v1805_v32, %v1608_v0  ;;  %v1559_v54 = vpop.f32.mrf.mxu1 }
 0x2da   : > { %v1609_v34 = vadd.f32 %v1559_v54, %v3308_v51 }
 0x2db   : > { %v2303_v9 = vpop.f32.mrf.mxu0  ;;  %2465 = vst [vmem:[%s3401_s22 + $0xc8] sm:$0xff] %v2429_v11  ;;  %v2104_v5 = vadd.f32 %v2053_v37, %v1856_v33  ;;  %v2063_v41 = vpop.f32.mrf.mxu3 }
 0x2dd   : > { %v2352_v1 = vadd.f32 %v2301_v4, %v2104_v5 }
 0x2df   : > { %v2390_v2 = vmul.f32 %v3385_v3, %v2352_v1 }
 0x2e0   : > { %v1807_v58 = vpop.f32.mrf.mxu2 }
 0x2e1   : > { %v2430_v36 = vadd.f32 %v3390_v61, %v2390_v2  ;;  %v1857_v7 = vadd.f32 %v1807_v58, %v1609_v34  ;;  %v1562_v19 = vpop.f32.mrf.mxu1 }
 0x2e2   : > { %v1610_v39 = vadd.f32 %v1562_v19, %v3313_v18 }
 0x2e3   : > { %v2306_v30 = vpop.f32.mrf.mxu0  ;;  %2466 = vst [vmem:[%s3401_s22 + $0xd0] sm:$0xff] %v2430_v36  ;;  %v2105_v52 = vadd.f32 %v2055_v31, %v1857_v7  ;;  %v2065_v26 = vpop.f32.mrf.mxu3 }
 0x2e5   : > { %v2353_v63 = vadd.f32 %v2303_v9, %v2105_v52 }
 0x2e7   : > { %v2391_v14 = vmul.f32 %v3385_v3, %v2353_v63 }
 0x2e8   : > { %v1810_v29 = vpop.f32.mrf.mxu2 }
 0x2e9   : > { %v2431_v21 = vadd.f32 %v3390_v61, %v2391_v14  ;;  %v1858_v51 = vadd.f32 %v1810_v29, %v1610_v39  ;;  %v1564_v35 = vpop.f32.mrf.mxu1 }
 0x2ea   : > { %v1611_v48 = vadd.f32 %v1564_v35, %v3324_v20 }
 0x2eb   : > { %v2308_v43 = vpop.f32.mrf.mxu0  ;;  %2467 = vst [vmem:[%s3401_s22 + $0xd8] sm:$0xff] %v2431_v21  ;;  %v2106_v60 = vadd.f32 %v2058_v47, %v1858_v51  ;;  %v2068_v57 = vpop.f32.mrf.mxu3 }
 0x2ed   : > { %v2354_v49 = vadd.f32 %v2306_v30, %v2106_v60 }
 0x2ef   : > { %v2392_v38 = vmul.f32 %v3385_v3, %v2354_v49 }
 0x2f0   : > { %v1812_v12 = vpop.f32.mrf.mxu2 }
 0x2f1   : > { %v2432_v15 = vadd.f32 %v3390_v61, %v2392_v38  ;;  %v1859_v18 = vadd.f32 %v1812_v12, %v1611_v48  ;;  %v1567_v44 = vpop.f32.mrf.mxu1 }
 0x2f2   : > { %v1612_v16 = vadd.f32 %v1567_v44, %v3329_v55 }
 0x2f3   : > { %v2311_v10 = vpop.f32.mrf.mxu0  ;;  %2468 = vst [vmem:[%s3401_s22 + $0xe0] sm:$0xff] %v2432_v15  ;;  %v2107_v59 = vadd.f32 %v2060_v62, %v1859_v18  ;;  %v2070_v1 = vpop.f32.mrf.mxu3 }
 0x2f5   : > { %v2355_v37 = vadd.f32 %v2308_v43, %v2107_v59 }
 0x2f7   : > { %v2393_v24 = vmul.f32 %v3385_v3, %v2355_v37 }
 0x2f8   : > { %v1815_v46 = vpop.f32.mrf.mxu2 }
 0x2f9   : > { %v2433_v27 = vadd.f32 %v3390_v61, %v2393_v24  ;;  %v1860_v20 = vadd.f32 %v1815_v46, %v1612_v16  ;;  %v1569_v42 = vpop.f32.mrf.mxu1 }
 0x2fa   : > { %v1613_v53 = vadd.f32 %v1569_v42, %v3340_v6 }
 0x2fb   : > { %2469 = vst [vmem:[%s3401_s22 + $0xe8] sm:$0xff] %v2433_v27  ;;  %v2108_v45 = vadd.f32 %v2063_v41, %v1860_v20  ;;  %v2313_v13 = vpop.f32.mrf.mxu0  ;;  %v2073_v14 = vpop.f32.mrf.mxu3 }
 0x2fd   : > { %v2356_v56 = vadd.f32 %v2311_v10, %v2108_v45 }
 0x2ff   : > { %v2394_v17 = vmul.f32 %v3385_v3, %v2356_v56 }
 0x300   : > { %v1817_v28 = vpop.f32.mrf.mxu2 }
 0x301   : > { %v2434_v4 = vadd.f32 %v3390_v61, %v2394_v17  ;;  %v1861_v55 = vadd.f32 %v1817_v28, %v1613_v53  ;;  %v1572_v31 = vpop.f32.mrf.mxu1 }
 0x302   : > { %v1614_v11 = vadd.f32 %v1572_v31, %v3345_v8 }
 0x303   : > { %2470 = vst [vmem:[%s3401_s22 + $0xf0] sm:$0xff] %v2434_v4  ;;  %v2109_v50 = vadd.f32 %v2065_v26, %v1861_v55  ;;  %v2316_v0 = vpop.f32.mrf.mxu0  ;;  %v2075_v12 = vpop.f32.mrf.mxu3 }
 0x305   : > { %v2357_v22 = vadd.f32 %v2313_v13, %v2109_v50 }
 0x307   : > { %v2395_v32 = vmul.f32 %v3385_v3, %v2357_v22 }
 0x308   : > { %v1820_v33 = vpop.f32.mrf.mxu2 }
 0x309   : > { %v2435_v54 = vadd.f32 %v3390_v61, %v2395_v32  ;;  %v1862_v6 = vadd.f32 %v1820_v33, %v1614_v11  ;;  %v1574_v9 = vpop.f32.mrf.mxu1 }
 0x30a   : > { %v1615_v34 = vadd.f32 %v1574_v9, %v3358_v23 }
 0x30b   : > { %2471 = vst [vmem:[%s3401_s22 + $0xf8] sm:$0xff] %v2435_v54  ;;  %v2110_v5 = vadd.f32 %v2068_v57, %v1862_v6  ;;  %v2318_v58 = vpop.f32.mrf.mxu0 }
 0x30d   : > { %v2358_v47 = vadd.f32 %v2316_v0, %v2110_v5 }
 0x30f   : > { %v2396_v2 = vmul.f32 %v3385_v3, %v2358_v47 }
 0x310   : > { %v1822_v36 = vpop.f32.mrf.mxu2 }
 0x311   : > { %v2436_v7 = vadd.f32 %v3390_v61, %v2396_v2  ;;  %v1863_v8 = vadd.f32 %v1822_v36, %v1615_v34  ;;  %v1577_v19 = vpop.f32.mrf.mxu1 }
 0x312   : > { %v1616_v62 = vadd.f32 %v1577_v19, %v3365_v25 }
 0x313   : > { %2472 = vst [vmem:[%s3401_s22 + $0x100] sm:$0xff] %v2436_v7  ;;  %v2111_v30 = vadd.f32 %v2070_v1, %v1863_v8  ;;  %v2321_v21 = vpop.f32.mrf.mxu0 }
 0x315   : > { %v2359_v52 = vadd.f32 %v2318_v58, %v2111_v30 }
 0x317   : > { %v2397_v63 = vmul.f32 %v3385_v3, %v2359_v52 }
 0x318   : > { %v1825_v39 = vpop.f32.mrf.mxu2 }
 0x319   : > { %v2437_v29 = vadd.f32 %v3390_v61, %v2397_v63  ;;  %v1864_v23 = vadd.f32 %v1825_v39, %v1616_v62  ;;  %v1579_v35 = vpop.f32.mrf.mxu1 }
 0x31a   : > { %v1617_v49 = vadd.f32 %v1579_v35, %v3379_v40 }
 0x31b   : > { %2473 = vst [vmem:[%s3401_s22 + $0x108] sm:$0xff] %v2437_v29  ;;  %v2112_v51 = vadd.f32 %v2073_v14, %v1864_v23  ;;  %v2323_v15 = vpop.f32.mrf.mxu0 }
 0x31d   : > { %v2360_v43 = vadd.f32 %v2321_v21, %v2112_v51 }
 0x31f   : > { %v2398_v60 = vmul.f32 %v3385_v3, %v2360_v43 }
 0x320   : > { %v1827_v38 = vpop.f32.mrf.mxu2 }
 0x321   : > { %v2438_v48 = vadd.f32 %v3390_v61, %v2398_v60  ;;  %v1865_v25 = vadd.f32 %v1827_v38, %v1617_v49 }
 0x323   : > { %2474 = vst [vmem:[%s3401_s22 + $0x110] sm:$0xff] %v2438_v48  ;;  %v2113_v41 = vadd.f32 %v2075_v12, %v1865_v25 }
 0x325   : > { %v2361_v18 = vadd.f32 %v2323_v15, %v2113_v41 }
 0x327   : > { %v2399_v44 = vmul.f32 %v3385_v3, %v2361_v18 }
 0x329   : > { %v2439_v10 = vadd.f32 %v3390_v61, %v2399_v44 }
 0x32b   : > { %2475 = vst [vmem:[%s3401_s22 + $0x118] sm:$0xff] %v2439_v10 }
 0x32c PF: > { %s15_s17 = sadd.s32 1, %s2730_s17  }
 0x32d   : > { %p12_p5 = scmp.ge.s32.totalorder %s15_s17, 4  }
 0x32f   :  { %14 = sbr.rel (!%p12_p5) target bundleno = 2 (0x2), region = 74 }

</bundles_post_ra>
